<compile_context>
chip_gen: v6e
topology: v6e:2x2x1
jax: 0.10.0
libtpu: 0.0.40
codegen_flags: <defaults>
</compile_context>

<pallas_src>
import jax
import jax.numpy as jnp
from jax.experimental import pallas as pl
from jax.experimental.pallas import tpu as pltpu

_EPS = 1e-5
_VMEM_LIMIT = 48 * 1024 * 1024  # leave headroom on v7x (64 MiB physical)


def _compiler_params():
    return pltpu.CompilerParams(
        dimension_semantics=("parallel", "parallel"),
        vmem_limit_bytes=_VMEM_LIMIT,
    )


# ----------------------------------------------------------------------------
# In-kernel helpers
# ----------------------------------------------------------------------------
def _row_mask(n_rows, strip_idx, n_strips, dtype):
    """(n_rows,1,1) mask zeroing the top/bottom halo row at the image border."""
    row = jax.lax.broadcasted_iota(jnp.int32, (n_rows, 1, 1), 0)
    keep_top = jnp.logical_or(row != 0, strip_idx != 0)
    keep_bot = jnp.logical_or(row != n_rows - 1, strip_idx != n_strips - 1)
    return jnp.logical_and(keep_top, keep_bot).astype(dtype)


def _conv3x3_taps(z, w_ref):
    """3x3 'same' conv of one row strip via 9 tap-accumulated MXU matmuls.

    z     : (TH+2, W, Cin) f32 strip, top/bottom halo rows already zero-masked
            at image borders.
    w_ref : (9, Cin, Cout) bf16 ref, taps ordered (dy, dx).
    returns (TH*W, Cout) f32 accumulator.
    """
    R, W, Cin = z.shape
    TH = R - 2
    Cout = w_ref.shape[-1]
    # 1-column zero pad along W only (no full pad scratch, no full zero store).
    zero_col = jnp.zeros((R, 1, Cin), z.dtype)
    zp = jnp.concatenate([zero_col, z, zero_col], axis=1)       # (R, W+2, Cin)
    acc = jnp.zeros((TH * W, Cout), jnp.float32)
    # TODO(synk): the dx=+/-1 taps could use pltpu.roll + a boundary-column
    # mask (idle XLU slot) instead of offset slices.
    for dy in range(3):
        for dx in range(3):
            t = zp[dy:dy + TH, dx:dx + W, :].reshape(TH * W, Cin)
            acc = acc + jnp.dot(t.astype(jnp.bfloat16), w_ref[dy * 3 + dx],
                                preferred_element_type=jnp.float32)
    return acc


def _write_stats(acc, stats_ref):
    """Single stacked (2, C) store of per-strip per-channel sum / sumsq."""
    s = jnp.sum(acc, axis=0, keepdims=True)
    ss = jnp.sum(acc * acc, axis=0, keepdims=True)
    stats_ref[0, 0, :, :] = jnp.concatenate([s, ss], axis=0)


# ----------------------------------------------------------------------------
# Kernels: grid = (N, row_strips), one image row-strip per program
# ----------------------------------------------------------------------------
def pool_conv1_kernel(xc_ref, xt_ref, xb_ref, w_ref, y_ref, stats_ref):
    i = pl.program_id(1)
    n_strips = pl.num_programs(1)
    _, RH, W, Cin = xc_ref.shape                   # RH = 2*TH input rows
    TH, W2 = RH // 2, W // 2

    def pool(a):                                   # (r, W, Cin) -> (r//2, W2, Cin)
        r = a.shape[0]
        a5 = a.reshape(r // 2, 2, W2, 2, Cin)
        return jnp.max(jnp.max(a5, axis=3), axis=1)

    # Pooled strip + 1 pooled halo row on each side (halo blocks are clamped
    # at the image border and zeroed here, implementing the conv zero-pad).
    z = jnp.concatenate([pool(xt_ref[0]), pool(xc_ref[0]), pool(xb_ref[0])],
                        axis=0)                                    # (TH+2, W2, Cin)
    z = z * _row_mask(TH + 2, i, n_strips, z.dtype)
    acc = _conv3x3_taps(z, w_ref)                                  # (TH*W2, Mid) f32
    _write_stats(acc, stats_ref)                                   # raw conv1 stats
    y_ref[0] = acc.reshape(TH, W2, acc.shape[-1]).astype(y_ref.dtype)


def bn_relu_conv2_kernel(yc_ref, yt_ref, yb_ref, scale_ref, shift_ref, w_ref,
                         y2_ref, stats_ref):
    i = pl.program_id(1)
    n_strips = pl.num_programs(1)
    _, TH, W, Mid = yc_ref.shape
    raw = jnp.concatenate([yt_ref[0], yc_ref[0], yb_ref[0]], axis=0)  # (TH+2,W,Mid)
    z = raw.astype(jnp.float32) * scale_ref[...] + shift_ref[...]     # BN1
    z = jnp.maximum(z, 0.0)                                           # ReLU1
    z = z * _row_mask(TH + 2, i, n_strips, z.dtype)   # conv zero-pad (post-act)
    acc = _conv3x3_taps(z, w_ref)                                     # (TH*W, Cout)
    _write_stats(acc, stats_ref)                                      # raw conv2 stats
    y2_ref[0] = acc.reshape(TH, W, acc.shape[-1]).astype(y2_ref.dtype)


def bn_relu_kernel(y_ref, scale_ref, shift_ref, o_ref):
    z = y_ref[0].astype(jnp.float32) * scale_ref[...] + shift_ref[...]  # BN2
    o_ref[0] = jnp.maximum(z, 0.0).astype(o_ref.dtype)                  # ReLU2


# ----------------------------------------------------------------------------
# pallas_call wrappers
# ----------------------------------------------------------------------------
def pool_conv1(x, w1, th):
    N, H, W, Cin = x.shape
    Mid = w1.shape[-1]
    H2, W2 = H // 2, W // 2
    ns = H2 // th
    return pl.pallas_call(
        pool_conv1_kernel,
        out_shape=(jax.ShapeDtypeStruct((N, H2, W2, Mid), jnp.bfloat16),
                   jax.ShapeDtypeStruct((N, ns, 2, Mid), jnp.float32)),
        grid=(N, ns),
        in_specs=[
            # center: 2*th input rows (th pooled output rows)
            pl.BlockSpec((1, 2 * th, W, Cin), lambda n, i: (n, i, 0, 0)),
            # top halo: 2 input rows (1 pooled row), clamped at the border
            pl.BlockSpec((1, 2, W, Cin),
                         lambda n, i: (n, jnp.maximum(i * th - 1, 0), 0, 0)),
            # bottom halo
            pl.BlockSpec((1, 2, W, Cin),
                         lambda n, i: (n, jnp.minimum(i * th + th, H // 2 - 1), 0, 0)),
            pl.BlockSpec((9, Cin, Mid), lambda n, i: (0, 0, 0)),
        ],
        out_specs=(pl.BlockSpec((1, th, W2, Mid), lambda n, i: (n, i, 0, 0)),
                   pl.BlockSpec((1, 1, 2, Mid), lambda n, i: (n, i, 0, 0))),
        compiler_params=_compiler_params(),
    )(x, x, x, w1)


def bn_relu_conv2(y1, scale, shift, w2, th):
    N, H2, W2, Mid = y1.shape
    Cout = w2.shape[-1]
    ns = H2 // th
    return pl.pallas_call(
        bn_relu_conv2_kernel,
        out_shape=(jax.ShapeDtypeStruct((N, H2, W2, Cout), jnp.bfloat16),
                   jax.ShapeDtypeStruct((N, ns, 2, Cout), jnp.float32)),
        grid=(N, ns),
        in_specs=[
            pl.BlockSpec((1, th, W2, Mid), lambda n, i: (n, i, 0, 0)),
            pl.BlockSpec((1, 1, W2, Mid),
                         lambda n, i: (n, jnp.maximum(i * th - 1, 0), 0, 0)),
            pl.BlockSpec((1, 1, W2, Mid),
                         lambda n, i: (n, jnp.minimum(i * th + th, H2 - 1), 0, 0)),
            pl.BlockSpec((1, Mid), lambda n, i: (0, 0)),
            pl.BlockSpec((1, Mid), lambda n, i: (0, 0)),
            pl.BlockSpec((9, Mid, Cout), lambda n, i: (0, 0, 0)),
        ],
        out_specs=(pl.BlockSpec((1, th, W2, Cout), lambda n, i: (n, i, 0, 0)),
                   pl.BlockSpec((1, 1, 2, Cout), lambda n, i: (n, i, 0, 0))),
        compiler_params=_compiler_params(),
    )(y1, y1, y1, scale, shift, w2)


def bn_relu(y2, scale, shift, th):
    N, H2, W2, C = y2.shape
    ns = H2 // th
    return pl.pallas_call(
        bn_relu_kernel,
        out_shape=jax.ShapeDtypeStruct((N, H2, W2, C), jnp.float32),
        grid=(N, ns),
        in_specs=[pl.BlockSpec((1, th, W2, C), lambda n, i: (n, i, 0, 0)),
                  pl.BlockSpec((1, C), lambda n, i: (0, 0)),
                  pl.BlockSpec((1, C), lambda n, i: (0, 0))],
        out_specs=pl.BlockSpec((1, th, W2, C), lambda n, i: (n, i, 0, 0)),
        compiler_params=_compiler_params(),
    )(y2, scale, shift)


# ----------------------------------------------------------------------------
# Host-side glue
# ----------------------------------------------------------------------------
def _pick_strip_rows(h2):
    """Largest divisor of H/2 <= target: >=2 strips for pipelining/megacore,
    small enough to keep the per-step footprint under the VMEM budget."""
    target = min(64, max(1, h2 // 2))
    th = 1
    for d in range(1, h2 + 1):
        if h2 % d == 0 and d <= target:
            th = d
    return th


def _bn_scale_shift(stats, count, gamma, beta):
    """Fold per-strip (sum, sumsq) into BN scale/shift (training mode, biased var)."""
    # TODO(synk): E[x^2]-mean^2 in f32 is cancellation-prone for very large
    # count; switch to a mean-shifted accumulation at production sizes.
    s = jnp.sum(stats[:, :, 0, :], axis=(0, 1))
    ss = jnp.sum(stats[:, :, 1, :], axis=(0, 1))
    mean = s / count
    var = jnp.maximum(ss / count - mean * mean, 0.0)
    scale = gamma * jax.lax.rsqrt(var + _EPS)
    shift = beta - mean * scale
    return scale.reshape(1, -1), shift.reshape(1, -1)


def down_forward(x_nchw, params):
    x = jnp.transpose(x_nchw, (0, 2, 3, 1)).astype(jnp.float32)   # NCHW -> NHWC
    N, H, W, Cin = x.shape
    assert H % 2 == 0 and W % 2 == 0, "MaxPool2d(2) needs even spatial dims"
    H2, W2 = H // 2, W // 2
    th = _pick_strip_rows(H2)
    count = float(N * H2 * W2)

    mid = params["w1"].shape[-1]
    cout = params["w2"].shape[-1]
    # (3,3,Cin,Cout) -> (9,Cin,Cout) bf16, taps ordered (dy, dx).
    w1 = params["w1"].reshape(9, Cin, mid).astype(jnp.bfloat16)
    w2 = params["w2"].reshape(9, mid, cout).astype(jnp.bfloat16)

    y1, st1 = pool_conv1(x, w1, th)                                 # pool + conv1
    sc1, sh1 = _bn_scale_shift(st1, count, params["g1"], params["be1"])
    y2, st2 = bn_relu_conv2(y1, sc1, sh1, w2, th)                   # BN1+ReLU1+conv2
    sc2, sh2 = _bn_scale_shift(st2, count, params["g2"], params["be2"])
    out = bn_relu(y2, sc2, sh2, th)                                 # BN2+ReLU2
    return jnp.transpose(out, (0, 3, 1, 2))                         # NHWC -> NCHW


def init_params(key, in_channels, out_channels):
    mid = out_channels  # DoubleConv: mid_channels defaults to out_channels
    k1, k2, k3, k4, k5, k6 = jax.random.split(key, 6)
    return {
        "w1": 0.1 * jax.random.normal(k1, (3, 3, in_channels, mid), jnp.float32),
        "g1": 1.0 + 0.1 * jax.random.normal(k3, (mid,), jnp.float32),
        "be1": 0.1 * jax.random.normal(k4, (mid,), jnp.float32),
        "w2": 0.1 * jax.random.normal(k2, (3, 3, mid, out_channels), jnp.float32),
        "g2": 1.0 + 0.1 * jax.random.normal(k5, (out_channels,), jnp.float32),
        "be2": 0.1 * jax.random.normal(k6, (out_channels,), jnp.float32),
    }


def reference_forward(x_nchw, params):
    """Pure-JAX (XLA) reference with identical semantics, f32 throughout."""
    x = jnp.transpose(x_nchw, (0, 2, 3, 1)).astype(jnp.float32)
    x = jax.lax.reduce_window(x, -jnp.inf, jax.lax.max,
                              (1, 2, 2, 1), (1, 2, 2, 1), "VALID")

    def conv_bn_relu(x, w, g, b):
        y = jax.lax.conv_general_dilated(
            x, w, window_strides=(1, 1), padding=((1, 1), (1, 1)),
            dimension_numbers=("NHWC", "HWIO", "NHWC"))
        m = jnp.mean(y, axis=(0, 1, 2))
        v = jnp.mean(jnp.square(y - m), axis=(0, 1, 2))
        y = (y - m) * jax.lax.rsqrt(v + _EPS) * g + b
        return jnp.maximum(y, 0.0)

    x = conv_bn_relu(x, params["w1"], params["g1"], params["be1"])
    x = conv_bn_relu(x, params["w2"], params["g2"], params["be2"])
    return jnp.transpose(x, (0, 3, 1, 2))


if __name__ == "__main__":
    key = jax.random.PRNGKey(0)
    k_x, k_p = jax.random.split(key)

    N, Cin, H, W = 2, 4, 16, 16
    Cout = 8
    x = jax.random.normal(k_x, (N, Cin, H, W), jnp.float32)  # NCHW, like PyTorch
    params = init_params(k_p, Cin, Cout)

    out = jax.block_until_ready(down_forward(x, params))
    ref = jax.block_until_ready(reference_forward(x, params))

    assert out.shape == (N, Cout, H // 2, W // 2), out.shape
    assert bool(jnp.all(jnp.isfinite(out)))
    assert bool(jnp.all(out >= 0.0))  # final ReLU
    # bf16 matmul operands + bf16 intermediates, f32 accumulation/stats
    max_err = float(jnp.max(jnp.abs(out - ref)))
    assert max_err < 0.2, max_err
    print("KERNEL_OK")
</pallas_src>

<mosaic_0001>
module attributes {stable_mosaic.version = 11 : i64} {
  func.func @pool_conv1_kernel(%arg0: i32, %arg1: i32, %arg2: memref<1x8x16x4xf32, #tpu.memory_space<vmem>>, %arg3: memref<1x2x16x4xf32, #tpu.memory_space<vmem>>, %arg4: memref<1x2x16x4xf32, #tpu.memory_space<vmem>>, %arg5: memref<9x4x8xbf16, #tpu.memory_space<vmem>>, %arg6: memref<1x4x8x8xbf16, #tpu.memory_space<vmem>>, %arg7: memref<1x1x2x8xf32, #tpu.memory_space<vmem>>) attributes {dimension_semantics = [#tpu.dimension_semantics<parallel>, #tpu.dimension_semantics<parallel>], iteration_bounds = array<i64: 2, 2>, scalar_prefetch = 0 : i64, scratch_operands = 0 : i64, tpu.core_type = #tpu.core_type<tc>, window_params = [{transform_indices = @transform_0, window_bounds = array<i64: 1, 8, 16, 4>}, {transform_indices = @transform_1, window_bounds = array<i64: 1, 2, 16, 4>}, {transform_indices = @transform_2, window_bounds = array<i64: 1, 2, 16, 4>}, {pipeline_mode = #tpu.pipeline_mode<synchronous>, transform_indices = @transform_3, window_bounds = array<i64: 9, 4, 8>}, {transform_indices = @transform_4, window_bounds = array<i64: 1, 4, 8, 8>}, {transform_indices = @transform_5, window_bounds = array<i64: 1, 1, 2, 8>}]} {
    %c0 = arith.constant 0 : index
    %c0_0 = arith.constant 0 : index
    %c0_1 = arith.constant 0 : index
    %c0_2 = arith.constant 0 : index
    %0 = vector.load %arg3[%c0, %c0_0, %c0_1, %c0_2] : memref<1x2x16x4xf32, #tpu.memory_space<vmem>>, vector<1x2x16x4xf32>
    %1 = vector.shape_cast %0 : vector<1x2x16x4xf32> to vector<2x16x4xf32>
    %2 = vector.shape_cast %1 : vector<2x16x4xf32> to vector<1x2x8x2x4xf32>
    %cst = arith.constant dense<0xFF800000> : vector<1x2x8x4xf32>
    %3 = vector.multi_reduction <maximumf>, %2, %cst [3] : vector<1x2x8x2x4xf32> to vector<1x2x8x4xf32>
    %cst_3 = arith.constant dense<0xFF800000> : vector<1x8x4xf32>
    %4 = vector.multi_reduction <maximumf>, %3, %cst_3 [1] : vector<1x2x8x4xf32> to vector<1x8x4xf32>
    %c0_4 = arith.constant 0 : index
    %c0_5 = arith.constant 0 : index
    %c0_6 = arith.constant 0 : index
    %c0_7 = arith.constant 0 : index
    %5 = vector.load %arg2[%c0_4, %c0_5, %c0_6, %c0_7] : memref<1x8x16x4xf32, #tpu.memory_space<vmem>>, vector<1x8x16x4xf32>
    %6 = vector.shape_cast %5 : vector<1x8x16x4xf32> to vector<8x16x4xf32>
    %7 = vector.shape_cast %6 : vector<8x16x4xf32> to vector<4x2x8x2x4xf32>
    %cst_8 = arith.constant dense<0xFF800000> : vector<4x2x8x4xf32>
    %8 = vector.multi_reduction <maximumf>, %7, %cst_8 [3] : vector<4x2x8x2x4xf32> to vector<4x2x8x4xf32>
    %cst_9 = arith.constant dense<0xFF800000> : vector<4x8x4xf32>
    %9 = vector.multi_reduction <maximumf>, %8, %cst_9 [1] : vector<4x2x8x4xf32> to vector<4x8x4xf32>
    %c0_10 = arith.constant 0 : index
    %c0_11 = arith.constant 0 : index
    %c0_12 = arith.constant 0 : index
    %c0_13 = arith.constant 0 : index
    %10 = vector.load %arg4[%c0_10, %c0_11, %c0_12, %c0_13] : memref<1x2x16x4xf32, #tpu.memory_space<vmem>>, vector<1x2x16x4xf32>
    %11 = vector.shape_cast %10 : vector<1x2x16x4xf32> to vector<2x16x4xf32>
    %12 = vector.shape_cast %11 : vector<2x16x4xf32> to vector<1x2x8x2x4xf32>
    %cst_14 = arith.constant dense<0xFF800000> : vector<1x2x8x4xf32>
    %13 = vector.multi_reduction <maximumf>, %12, %cst_14 [3] : vector<1x2x8x2x4xf32> to vector<1x2x8x4xf32>
    %cst_15 = arith.constant dense<0xFF800000> : vector<1x8x4xf32>
    %14 = vector.multi_reduction <maximumf>, %13, %cst_15 [1] : vector<1x2x8x4xf32> to vector<1x8x4xf32>
    %15 = tpu.concatenate %4, %9, %14 in 0 : vector<1x8x4xf32>, vector<4x8x4xf32>, vector<1x8x4xf32> -> vector<6x8x4xf32>
    %16 = tpu.iota {dimensions = array<i32: 0>} : vector<6x1x1xi32>
    %c0_i32 = arith.constant 0 : i32
    %17 = vector.broadcast %c0_i32 : i32 to vector<6x1x1xi32>
    %18 = arith.cmpi ne, %16, %17 : vector<6x1x1xi32>
    %c0_i32_16 = arith.constant 0 : i32
    %19 = arith.cmpi ne, %arg1, %c0_i32_16 : i32
    %20 = vector.broadcast %19 : i1 to vector<6x1x1xi1>
    %21 = arith.ori %18, %20 : vector<6x1x1xi1>
    %c5_i32 = arith.constant 5 : i32
    %22 = vector.broadcast %c5_i32 : i32 to vector<6x1x1xi32>
    %23 = arith.cmpi ne, %16, %22 : vector<6x1x1xi32>
    %c1_i32 = arith.constant 1 : i32
    %24 = arith.cmpi ne, %arg1, %c1_i32 : i32
    %25 = vector.broadcast %24 : i1 to vector<6x1x1xi1>
    %26 = arith.ori %23, %25 : vector<6x1x1xi1>
    %27 = arith.andi %21, %26 : vector<6x1x1xi1>
    %28 = arith.extui %27 : vector<6x1x1xi1> to vector<6x1x1xi32>
    %29 = arith.sitofp %28 : vector<6x1x1xi32> to vector<6x1x1xf32>
    %30 = vector.broadcast %29 : vector<6x1x1xf32> to vector<6x8x4xf32>
    %31 = arith.mulf %15, %30 : vector<6x8x4xf32>
    %cst_17 = arith.constant 0.000000e+00 : f32
    %32 = vector.broadcast %cst_17 : f32 to vector<6x1x4xf32>
    %33 = tpu.concatenate %32, %31, %32 in 1 : vector<6x1x4xf32>, vector<6x8x4xf32>, vector<6x1x4xf32> -> vector<6x10x4xf32>
    %cst_18 = arith.constant 0.000000e+00 : f32
    %34 = vector.broadcast %cst_18 : f32 to vector<32x8xf32>
    %35 = vector.extract_strided_slice %33 {offsets = [0, 0, 0], sizes = [4, 8, 4], strides = [1, 1, 1]} : vector<6x10x4xf32> to vector<4x8x4xf32>
    %36 = vector.shape_cast %35 : vector<4x8x4xf32> to vector<32x4xf32>
    %37 = arith.truncf %36 : vector<32x4xf32> to vector<32x4xbf16>
    %c0_19 = arith.constant 0 : index
    %c0_20 = arith.constant 0 : index
    %c0_21 = arith.constant 0 : index
    %38 = vector.load %arg5[%c0_19, %c0_20, %c0_21] : memref<9x4x8xbf16, #tpu.memory_space<vmem>>, vector<1x4x8xbf16>
    %39 = vector.shape_cast %38 : vector<1x4x8xbf16> to vector<4x8xbf16>
    %cst_22 = arith.constant dense<0.000000e+00> : vector<32x8xf32>
    %40 = tpu.matmul %37, %39, %cst_22 {dimension_numbers = #tpu.dot_dimension_numbers<[1], [0], [0], [1], [0, 0, 1, 1], [], []>} : vector<32x4xbf16>, vector<4x8xbf16>, vector<32x8xf32> -> vector<32x8xf32>
    %41 = arith.addf %34, %40 : vector<32x8xf32>
    %42 = vector.extract_strided_slice %33 {offsets = [0, 1, 0], sizes = [4, 8, 4], strides = [1, 1, 1]} : vector<6x10x4xf32> to vector<4x8x4xf32>
    %43 = vector.shape_cast %42 : vector<4x8x4xf32> to vector<32x4xf32>
    %44 = arith.truncf %43 : vector<32x4xf32> to vector<32x4xbf16>
    %c1 = arith.constant 1 : index
    %c0_23 = arith.constant 0 : index
    %c0_24 = arith.constant 0 : index
    %45 = vector.load %arg5[%c1, %c0_23, %c0_24] : memref<9x4x8xbf16, #tpu.memory_space<vmem>>, vector<1x4x8xbf16>
    %46 = vector.shape_cast %45 : vector<1x4x8xbf16> to vector<4x8xbf16>
    %cst_25 = arith.constant dense<0.000000e+00> : vector<32x8xf32>
    %47 = tpu.matmul %44, %46, %cst_25 {dimension_numbers = #tpu.dot_dimension_numbers<[1], [0], [0], [1], [0, 0, 1, 1], [], []>} : vector<32x4xbf16>, vector<4x8xbf16>, vector<32x8xf32> -> vector<32x8xf32>
    %48 = arith.addf %41, %47 : vector<32x8xf32>
    %49 = vector.extract_strided_slice %33 {offsets = [0, 2, 0], sizes = [4, 8, 4], strides = [1, 1, 1]} : vector<6x10x4xf32> to vector<4x8x4xf32>
    %50 = vector.shape_cast %49 : vector<4x8x4xf32> to vector<32x4xf32>
    %51 = arith.truncf %50 : vector<32x4xf32> to vector<32x4xbf16>
    %c2 = arith.constant 2 : index
    %c0_26 = arith.constant 0 : index
    %c0_27 = arith.constant 0 : index
    %52 = vector.load %arg5[%c2, %c0_26, %c0_27] : memref<9x4x8xbf16, #tpu.memory_space<vmem>>, vector<1x4x8xbf16>
    %53 = vector.shape_cast %52 : vector<1x4x8xbf16> to vector<4x8xbf16>
    %cst_28 = arith.constant dense<0.000000e+00> : vector<32x8xf32>
    %54 = tpu.matmul %51, %53, %cst_28 {dimension_numbers = #tpu.dot_dimension_numbers<[1], [0], [0], [1], [0, 0, 1, 1], [], []>} : vector<32x4xbf16>, vector<4x8xbf16>, vector<32x8xf32> -> vector<32x8xf32>
    %55 = arith.addf %48, %54 : vector<32x8xf32>
    %56 = vector.extract_strided_slice %33 {offsets = [1, 0, 0], sizes = [4, 8, 4], strides = [1, 1, 1]} : vector<6x10x4xf32> to vector<4x8x4xf32>
    %57 = vector.shape_cast %56 : vector<4x8x4xf32> to vector<32x4xf32>
    %58 = arith.truncf %57 : vector<32x4xf32> to vector<32x4xbf16>
    %c3 = arith.constant 3 : index
    %c0_29 = arith.constant 0 : index
    %c0_30 = arith.constant 0 : index
    %59 = vector.load %arg5[%c3, %c0_29, %c0_30] : memref<9x4x8xbf16, #tpu.memory_space<vmem>>, vector<1x4x8xbf16>
    %60 = vector.shape_cast %59 : vector<1x4x8xbf16> to vector<4x8xbf16>
    %cst_31 = arith.constant dense<0.000000e+00> : vector<32x8xf32>
    %61 = tpu.matmul %58, %60, %cst_31 {dimension_numbers = #tpu.dot_dimension_numbers<[1], [0], [0], [1], [0, 0, 1, 1], [], []>} : vector<32x4xbf16>, vector<4x8xbf16>, vector<32x8xf32> -> vector<32x8xf32>
    %62 = arith.addf %55, %61 : vector<32x8xf32>
    %63 = vector.extract_strided_slice %33 {offsets = [1, 1, 0], sizes = [4, 8, 4], strides = [1, 1, 1]} : vector<6x10x4xf32> to vector<4x8x4xf32>
    %64 = vector.shape_cast %63 : vector<4x8x4xf32> to vector<32x4xf32>
    %65 = arith.truncf %64 : vector<32x4xf32> to vector<32x4xbf16>
    %c4 = arith.constant 4 : index
    %c0_32 = arith.constant 0 : index
    %c0_33 = arith.constant 0 : index
    %66 = vector.load %arg5[%c4, %c0_32, %c0_33] : memref<9x4x8xbf16, #tpu.memory_space<vmem>>, vector<1x4x8xbf16>
    %67 = vector.shape_cast %66 : vector<1x4x8xbf16> to vector<4x8xbf16>
    %cst_34 = arith.constant dense<0.000000e+00> : vector<32x8xf32>
    %68 = tpu.matmul %65, %67, %cst_34 {dimension_numbers = #tpu.dot_dimension_numbers<[1], [0], [0], [1], [0, 0, 1, 1], [], []>} : vector<32x4xbf16>, vector<4x8xbf16>, vector<32x8xf32> -> vector<32x8xf32>
    %69 = arith.addf %62, %68 : vector<32x8xf32>
    %70 = vector.extract_strided_slice %33 {offsets = [1, 2, 0], sizes = [4, 8, 4], strides = [1, 1, 1]} : vector<6x10x4xf32> to vector<4x8x4xf32>
    %71 = vector.shape_cast %70 : vector<4x8x4xf32> to vector<32x4xf32>
    %72 = arith.truncf %71 : vector<32x4xf32> to vector<32x4xbf16>
    %c5 = arith.constant 5 : index
    %c0_35 = arith.constant 0 : index
    %c0_36 = arith.constant 0 : index
    %73 = vector.load %arg5[%c5, %c0_35, %c0_36] : memref<9x4x8xbf16, #tpu.memory_space<vmem>>, vector<1x4x8xbf16>
    %74 = vector.shape_cast %73 : vector<1x4x8xbf16> to vector<4x8xbf16>
    %cst_37 = arith.constant dense<0.000000e+00> : vector<32x8xf32>
    %75 = tpu.matmul %72, %74, %cst_37 {dimension_numbers = #tpu.dot_dimension_numbers<[1], [0], [0], [1], [0, 0, 1, 1], [], []>} : vector<32x4xbf16>, vector<4x8xbf16>, vector<32x8xf32> -> vector<32x8xf32>
    %76 = arith.addf %69, %75 : vector<32x8xf32>
    %77 = vector.extract_strided_slice %33 {offsets = [2, 0, 0], sizes = [4, 8, 4], strides = [1, 1, 1]} : vector<6x10x4xf32> to vector<4x8x4xf32>
    %78 = vector.shape_cast %77 : vector<4x8x4xf32> to vector<32x4xf32>
    %79 = arith.truncf %78 : vector<32x4xf32> to vector<32x4xbf16>
    %c6 = arith.constant 6 : index
    %c0_38 = arith.constant 0 : index
    %c0_39 = arith.constant 0 : index
    %80 = vector.load %arg5[%c6, %c0_38, %c0_39] : memref<9x4x8xbf16, #tpu.memory_space<vmem>>, vector<1x4x8xbf16>
    %81 = vector.shape_cast %80 : vector<1x4x8xbf16> to vector<4x8xbf16>
    %cst_40 = arith.constant dense<0.000000e+00> : vector<32x8xf32>
    %82 = tpu.matmul %79, %81, %cst_40 {dimension_numbers = #tpu.dot_dimension_numbers<[1], [0], [0], [1], [0, 0, 1, 1], [], []>} : vector<32x4xbf16>, vector<4x8xbf16>, vector<32x8xf32> -> vector<32x8xf32>
    %83 = arith.addf %76, %82 : vector<32x8xf32>
    %84 = vector.extract_strided_slice %33 {offsets = [2, 1, 0], sizes = [4, 8, 4], strides = [1, 1, 1]} : vector<6x10x4xf32> to vector<4x8x4xf32>
    %85 = vector.shape_cast %84 : vector<4x8x4xf32> to vector<32x4xf32>
    %86 = arith.truncf %85 : vector<32x4xf32> to vector<32x4xbf16>
    %c7 = arith.constant 7 : index
    %c0_41 = arith.constant 0 : index
    %c0_42 = arith.constant 0 : index
    %87 = vector.load %arg5[%c7, %c0_41, %c0_42] : memref<9x4x8xbf16, #tpu.memory_space<vmem>>, vector<1x4x8xbf16>
    %88 = vector.shape_cast %87 : vector<1x4x8xbf16> to vector<4x8xbf16>
    %cst_43 = arith.constant dense<0.000000e+00> : vector<32x8xf32>
    %89 = tpu.matmul %86, %88, %cst_43 {dimension_numbers = #tpu.dot_dimension_numbers<[1], [0], [0], [1], [0, 0, 1, 1], [], []>} : vector<32x4xbf16>, vector<4x8xbf16>, vector<32x8xf32> -> vector<32x8xf32>
    %90 = arith.addf %83, %89 : vector<32x8xf32>
    %91 = vector.extract_strided_slice %33 {offsets = [2, 2, 0], sizes = [4, 8, 4], strides = [1, 1, 1]} : vector<6x10x4xf32> to vector<4x8x4xf32>
    %92 = vector.shape_cast %91 : vector<4x8x4xf32> to vector<32x4xf32>
    %93 = arith.truncf %92 : vector<32x4xf32> to vector<32x4xbf16>
    %c8 = arith.constant 8 : index
    %c0_44 = arith.constant 0 : index
    %c0_45 = arith.constant 0 : index
    %94 = vector.load %arg5[%c8, %c0_44, %c0_45] : memref<9x4x8xbf16, #tpu.memory_space<vmem>>, vector<1x4x8xbf16>
    %95 = vector.shape_cast %94 : vector<1x4x8xbf16> to vector<4x8xbf16>
    %cst_46 = arith.constant dense<0.000000e+00> : vector<32x8xf32>
    %96 = tpu.matmul %93, %95, %cst_46 {dimension_numbers = #tpu.dot_dimension_numbers<[1], [0], [0], [1], [0, 0, 1, 1], [], []>} : vector<32x4xbf16>, vector<4x8xbf16>, vector<32x8xf32> -> vector<32x8xf32>
    %97 = arith.addf %90, %96 : vector<32x8xf32>
    %cst_47 = arith.constant dense<0.000000e+00> : vector<8xf32>
    %98 = vector.multi_reduction <add>, %97, %cst_47 [0] : vector<32x8xf32> to vector<8xf32>
    %99 = vector.shape_cast %98 : vector<8xf32> to vector<1x8xf32>
    %100 = arith.mulf %97, %97 : vector<32x8xf32>
    %cst_48 = arith.constant dense<0.000000e+00> : vector<8xf32>
    %101 = vector.multi_reduction <add>, %100, %cst_48 [0] : vector<32x8xf32> to vector<8xf32>
    %102 = vector.shape_cast %101 : vector<8xf32> to vector<1x8xf32>
    %103 = tpu.concatenate %99, %102 in 0 : vector<1x8xf32>, vector<1x8xf32> -> vector<2x8xf32>
    %c0_49 = arith.constant 0 : index
    %c0_50 = arith.constant 0 : index
    %c0_51 = arith.constant 0 : index
    %c0_52 = arith.constant 0 : index
    %104 = vector.load %arg7[%c0_49, %c0_50, %c0_51, %c0_52] : memref<1x1x2x8xf32, #tpu.memory_space<vmem>>, vector<1x1x2x8xf32>
    %105 = vector.shape_cast %104 : vector<1x1x2x8xf32> to vector<2x8xf32>
    %106 = vector.shape_cast %103 : vector<2x8xf32> to vector<1x1x2x8xf32>
    tpu.vector_store %arg7[%c0_49, %c0_50, %c0_51, %c0_52], %106 {strides = array<i32>} : memref<1x1x2x8xf32, #tpu.memory_space<vmem>>, vector<1x1x2x8xf32>,
    %107 = vector.shape_cast %97 : vector<32x8xf32> to vector<4x8x8xf32>
    %108 = arith.truncf %107 : vector<4x8x8xf32> to vector<4x8x8xbf16>
    %c0_53 = arith.constant 0 : index
    %c0_54 = arith.constant 0 : index
    %c0_55 = arith.constant 0 : index
    %c0_56 = arith.constant 0 : index
    %109 = vector.load %arg6[%c0_53, %c0_54, %c0_55, %c0_56] : memref<1x4x8x8xbf16, #tpu.memory_space<vmem>>, vector<1x4x8x8xbf16>
    %110 = vector.shape_cast %109 : vector<1x4x8x8xbf16> to vector<4x8x8xbf16>
    %111 = vector.shape_cast %108 : vector<4x8x8xbf16> to vector<1x4x8x8xbf16>
    tpu.vector_store %arg6[%c0_53, %c0_54, %c0_55, %c0_56], %111 {strides = array<i32>} : memref<1x4x8x8xbf16, #tpu.memory_space<vmem>>, vector<1x4x8x8xbf16>,
    return
  }
  func.func @transform_0(%arg0: i32, %arg1: i32) -> (i32, i32, i32, i32) {
    %c0_i32 = arith.constant 0 : i32
    %c0_i32_0 = arith.constant 0 : i32
    %c0_i32_1 = arith.constant 0 : i32
    return %arg0, %arg1, %c0_i32, %c0_i32_0 : i32, i32, i32, i32
  }
  func.func @transform_1(%arg0: i32, %arg1: i32) -> (i32, i32, i32, i32) {
    %c4_i32 = arith.constant 4 : i32
    %0 = arith.muli %arg1, %c4_i32 : i32
    %c1_i32 = arith.constant 1 : i32
    %1 = arith.subi %0, %c1_i32 : i32
    %c0_i32 = arith.constant 0 : i32
    %2 = arith.maxsi %1, %c0_i32 : i32
    %c0_i32_0 = arith.constant 0 : i32
    %c0_i32_1 = arith.constant 0 : i32
    %c0_i32_2 = arith.constant 0 : i32
    return %arg0, %2, %c0_i32_0, %c0_i32_1 : i32, i32, i32, i32
  }
  func.func @transform_2(%arg0: i32, %arg1: i32) -> (i32, i32, i32, i32) {
    %c4_i32 = arith.constant 4 : i32
    %0 = arith.muli %arg1, %c4_i32 : i32
    %c4_i32_0 = arith.constant 4 : i32
    %1 = arith.addi %0, %c4_i32_0 : i32
    %c7_i32 = arith.constant 7 : i32
    %2 = arith.minsi %1, %c7_i32 : i32
    %c0_i32 = arith.constant 0 : i32
    %c0_i32_1 = arith.constant 0 : i32
    %c0_i32_2 = arith.constant 0 : i32
    return %arg0, %2, %c0_i32, %c0_i32_1 : i32, i32, i32, i32
  }
  func.func @transform_3(%arg0: i32, %arg1: i32) -> (i32, i32, i32) {
    %c0_i32 = arith.constant 0 : i32
    %c0_i32_0 = arith.constant 0 : i32
    %c0_i32_1 = arith.constant 0 : i32
    %c0_i32_2 = arith.constant 0 : i32
    return %c0_i32, %c0_i32_0, %c0_i32_1 : i32, i32, i32
  }
  func.func @transform_4(%arg0: i32, %arg1: i32) -> (i32, i32, i32, i32) {
    %c0_i32 = arith.constant 0 : i32
    %c0_i32_0 = arith.constant 0 : i32
    %c0_i32_1 = arith.constant 0 : i32
    return %arg0, %arg1, %c0_i32, %c0_i32_0 : i32, i32, i32, i32
  }
  func.func @transform_5(%arg0: i32, %arg1: i32) -> (i32, i32, i32, i32) {
    %c0_i32 = arith.constant 0 : i32
    %c0_i32_0 = arith.constant 0 : i32
    %c0_i32_1 = arith.constant 0 : i32
    return %arg0, %arg1, %c0_i32, %c0_i32_0 : i32, i32, i32, i32
  }
}

</mosaic_0001>

<bundles_post_ra>
// kernel: tpu_custom_call.1
= control target key start
LH: loop header
LB: loop body
LE: loop exit
PB: predicated region body
PF: predicated region fallthrough
CT: control target
= control target key end

     0   :  { %11 = vsyncpa [#allocation3], 0  ;;  %s4900_s0 = inlined_call_operand.vmem [shape: f32[2,16,16,4], index: 0, kind: input, shape index: {}]   ;;  %s4901_s1 = inlined_call_operand.vmem [shape: f32[2,16,16,4], index: 1, kind: input, shape index: {}]   ;;  %s4902_s2 = inlined_call_operand.vmem [shape: f32[2,16,16,4], index: 2, kind: input, shape index: {}]   ;;  %s4903_s3 = inlined_call_operand.vmem [shape: bf16[9,4,8], index: 3, kind: input, shape index: {}]   ;;  %s4904_s4 = inlined_call_operand.hbm [shape: bf16[2,8,8,8], index: 4, kind: output, shape index: {0}]   ;;  %s4905_s5 = inlined_call_operand.hbm [shape: f32[2,2,2,8], index: 5, kind: output, shape index: {1}]  }
   0x1   :  { %13 = vsyncpa [#allocation3 + $0x1], 0 }
   0x2   :  { %14 = vsyncpa [#allocation5], 0 }
   0x3   :  { %16 = vsyncpa [#allocation5 + $0x1], 0  ;;  %s3290_s18 = smov 0   ;;  %s3292_s19 = smov 0  }
   0x4   :  { %s3294_s20 = smov 0   ;;  %s3296_s21 = smov 0  }
   0x5   :  { %s3298_s22 = smov 0   ;;  %s3300_s23 = smov 0  }
   0x6   :  { %s3302_s24 = smov 0   ;;  %s3304_s25 = smov 0  }
   0x7 LB: > { %s2869_s26 = sadd.s32 4294967295, %s3252_s25   ;;  %s2870_s27 = sadd.s32 4294967294, %s3252_s25   ;;  %s3252_s25 = sphi %s3304_s25, %s22_s25   ;;  %s3248_s24 = sphi %s3302_s24, %s5248_s24   ;;  %s3244_s23 = sphi %s3300_s23, %s5247_s23   ;;  %s3240_s22 = sphi %s3298_s22, %s5246_s22   ;;  %s3236_s21 = sphi %s3296_s21, %s5245_s21   ;;  %s3232_s20 = sphi %s3294_s20, %s5244_s20   ;;  %s3228_s19 = sphi %s3292_s19, %s5243_s19   ;;  %s3224_s18 = sphi %s3290_s18, %s5242_s18  }
   0x8   : > { %s31_s28 = sadd.s32 1, %s3244_s23  ;;  %s34_s29 = sadd.s32 1, %s3248_s24 }
   0x9   : > { %p32_p0 = scmp.ge.s32.totalorder %s31_s28, 2  ;;  %p174_p1 = scmp.ne.s32.totalorder %s3232_s20, %s3228_s19 }
   0xa   : > { %p175_p2 = scmp.eq.s32.totalorder %s2869_s26, 3  ;;  %p180_p5 = scmp.ne.s32.totalorder %s3228_s19, %s3224_s18 }
   0xb   : > { %s5250_s28 = smov (%p32_p0, %s31_s28), 0  ;;  %s5252_s29 = smov (!%p32_p0, %s34_s29), %s3248_s24 }
   0xc   : > { %s160_s30 = ssub.s32 %s3244_s23, %s5250_s28  ;;  %p3341_p3 = por %p175_p2, %p174_p1 }
   0xd   : > { %p36_p4 = scmp.ge.s32.totalorder %s5252_s29, 2  ;;  %p181_p6 = scmp.eq.s32.totalorder %s2870_s27, 3 }
   0xe   : > { %p2879_p7 = scmp.ge.s32.totalorder %s3252_s25, 1  ;;  %p288_p9 = scmp.lt.s32.totalorder %s3252_s25, 5 }
   0xf   : > { %s5254_s29 = smov (%p36_p4, %s5252_s29), 0  ;;  %p3350_p8 = por %p181_p6, %p180_p5 }
  0x10   : > { %s159_s8 = ssub.s32 %s3248_s24, %s5254_s29  ;;  %s164_s9 = sadd.s32 1, %s3232_s20 }
  0x11   : > { %s161_s10 = sor.u32 %s160_s30, %s159_s8  ;;  %p289_p10 = pnand %p2879_p7, %p288_p9 }
  0x12   : > { %p162_p11 = scmp.eq.s32.totalorder %s161_s10, 0 }
  0x13   : > { %292 = sbr.rel (%p289_p10) target bundleno = 582 (0x246), region = 36 }
  0x14   : > { %s3359_s11 = scalar_select %p162_p11, %s3232_s20, %s164_s9  }
  0x18   : > { %v2899_v0 = vld [vmem:[%s4903_s3 + $0x2] sm:$0x3]  ;;  %vm2031_vm0 = vcmask 1041408   ;;  %v1995_v1 = vld [vmem:[%s4903_s3] sm:$0x3]  ;;  %s2882_s16 = sshll.u32 %s3236_s21, 3  ;;  %v417_v6 = vlaneseq }
  0x19   : > { %3015 = vmatprep.subr.msk.bf16.mxu0 %vm2031_vm0, %v2899_v0  ;;  %v2033_v2 = vsel %vm2031_vm0, %v2899_v0, 0  ;;  %3016 = vmatprep.subr.msk.bf16.mxu1 %vm2031_vm0, %v1995_v1  ;;  %v2091_v3 = vsel %vm2031_vm0, %v1995_v1, 0  ;;  %p355_p12 = scmp.lt.s32.totalorder %s3240_s22, 1  ;;  %p357_p13 = scmp.lt.s32.totalorder %s2882_s16, 15  ;;  %v3254_v4 = vmov 1983009808  }
  0x1a   : > { %2962 = vmatpush3.bf16.msra.mxu0 %v2033_v2  ;;  %2968 = vmatpush3.bf16.msra.mxu1 %v2091_v3  ;;  %s3374_s17 = sshll.u32 %s3236_s21, 2  ;;  %v415_v5 = vunpack.c.l.s4 %v3254_v4  ;;  %v418_v8 = vshrl.u32 %v417_v6, 7  ;;  %vm497_vm1 = vcmask 25600   ;;  %vm610_vm2 = vcmask 31744   ;;  %p1775_p5 = scmp.ne.s32.totalorder %s3236_s21, 0 }
  0x1b   : > { %s356_s26 = scalar_select %p355_p12, %s3240_s22, 1  ;;  %vm1886_vm4 = vcmask 1042434   ;;  %vm1889_vm5 = vcmask 1043459   ;;  %vm1892_vm7 = vcmask 1044484   ;;  %vm1895_vm8 = vcmask 1045509  }
  0x1c   : > { %s5256_s16 = smov (!%p357_p13, %s2882_s16), 15  ;;  %s2887_s30 = sadd.s32 4294967295, %s3374_s17  ;;  %v416_v7 = vunpack.c.0.s8 %v415_v5  ;;  %vm1898_vm9 = vcmask 1046534   ;;  %vm1901_vm10 = vcmask 1047559   ;;  %vm1980_vm11 = vcmask 1040384  }
  0x1d   : > { %s3377_s27 = sshll.u32 %s356_s26, 5  ;;  %s2883_s8 = sshll.u32 %s5256_s16, 1  ;;  %vm2004_vm12 = vcmask 1046528   ;;  %vm2142_vm13 = vcmask 1045504   ;;  %vm2667_vm14 = vcmask 60416   ;;  %vm2629_vm15 = vcmask 64512  }
  0x1e   : > { %p367_p0 = scmp.gt.s32.totalorder %s2887_s30, 0  ;;  %s361_s9 = sadd.s32 %s3377_s27, %s2883_s8  ;;  %v3390_v14 = vsub.s32 %v416_v7, %v418_v8 }
  0x1f   : > { %s2885_s10 = sshll.u32 %s361_s9, 3  ;;  %p1779_p6 = scmp.ne.s32.totalorder %s3236_s21, 1 }
  0x20   : > { %s3384_s14 = scalar_lea.vmem %s4900_s0, %s2885_s10  ;;  %s5258_s30 = smov (!%p367_p0, %s2887_s30), 0  ;;  %4977 = vst [vmem:[#allocation8_spill] sm:$0xff] %v3390_v14 }
  0x21   : > { %v635_v9 = vld [vmem:[%s3384_s14] sm:$0xff]  ;;  %v636_v10 = vld [vmem:[%s3384_s14 + $0x8] sm:$0xff]  ;;  %v637_v11 = vld [vmem:[%s3384_s14 + $0x10] sm:$0xff]  ;;  %s2888_s15 = sshll.u32 %s5258_s30, 1 }
  0x22   : > { %v638_v12 = vld [vmem:[%s3384_s14 + $0x18] sm:$0xff]  ;;  %v667_v13 = vcombine.high %v635_v9, %v635_v9  ;;  %p372_p1 = scmp.lt.s32.totalorder %s2888_s15, 15  ;;  %v684_v15 = vcombine.high %v636_v10, %v636_v10  ;;  %v701_v16 = vcombine.high %v637_v11, %v637_v11  ;;  %v3393_v17 = vrot.slane %v635_v9, %v3390_v14  ;;  %v639_v19 = vld [vmem:[%s3384_s14 + $0x20] sm:$0xff]  ;;  %v640_v26 = vld [vmem:[%s3384_s14 + $0x28] sm:$0xff] }
  0x23   : > { %v718_v18 = vcombine.high %v638_v12, %v638_v12  ;;  %v3400_v21 = vrot.slane %v636_v10, %v3390_v14  ;;  %v3403_v22 = vrot.slane %v637_v11, %v3390_v14  ;;  %v3406_v23 = vrot.slane %v638_v12, %v3390_v14  ;;  %v641_v31 = vld [vmem:[%s3384_s14 + $0x30] sm:$0xff]  ;;  %v642_v46 = vld [vmem:[%s3384_s14 + $0x38] sm:$0xff]  ;;  %v643_v9 = vld [vmem:[%s3384_s14 + $0x40] sm:$0xff] }
  0x24   : > { %s5260_s15 = smov (!%p372_p1, %s2888_s15), 15  ;;  %v3397_v20 = vrot.slane %v667_v13, %v3390_v14  ;;  %v3409_v24 = vrot.slane %v684_v15, %v3390_v14  ;;  %v3412_v25 = vrot.slane %v701_v16, %v3390_v14  ;;  %v735_v29 = vcombine.high %v639_v19, %v639_v19 }
  0x25   : > { %s2889_s16 = sshll.u32 %s5260_s15, 1  ;;  %v3419_v28 = vrot.slane %v718_v18, %v3390_v14  ;;  %v3422_v30 = vrot.slane %v639_v19, %v3390_v14  ;;  %v752_v40 = vcombine.high %v640_v26, %v640_v26  ;;  %v3445_v41 = vrot.slane %v640_v26, %v3390_v14 }
  0x26   : > { %s376_s26 = sadd.s32 %s2889_s16, %s3377_s27  ;;  %v3453_v48 = vrot.slane %v735_v29, %v3390_v14  ;;  %v769_v50 = vcombine.high %v641_v31, %v641_v31  ;;  %v3459_v54 = vrot.slane %v641_v31, %v3390_v14  ;;  %v786_v58 = vcombine.high %v642_v46, %v642_v46  ;;  %s385_s16 = sadd.s32 4, %s3374_s17 }
  0x27   : > { %s2891_s30 = sshll.u32 %s376_s26, 3  ;;  %v3463_v56 = vrot.slane %v752_v40, %v3390_v14  ;;  %v3471_v63 = vrot.slane %v642_v46, %v3390_v14  ;;  %p3972_p2 = scmp.lt.s32.totalorder %s385_s16, 7 }
  0x28   : > { %s3427_s10 = scalar_lea.vmem %s4901_s1, %s2891_s30  ;;  %4978 = vst [vmem:[#allocation9_spill] sm:$0xff] %v3459_v54  ;;  %v3477_v4 = vrot.slane %v769_v50, %v3390_v14 }
  0x29   : > { %v405_v36 = vld [vmem:[%s3427_s10] sm:$0xff]  ;;  %v406_v37 = vld [vmem:[%s3427_s10 + $0x8] sm:$0xff]  ;;  %v407_v59 = vld [vmem:[%s3427_s10 + $0x10] sm:$0xff]  ;;  %4979 = vst [vmem:[#allocation10_spill] sm:$0xff] %v3471_v63  ;;  %s5262_s16 = smov (!%p3972_p2, %s385_s16), 7 }
  0x2a   : > { %v413_v42 = vcombine.high %v405_v36, %v405_v36  ;;  %v420_v43 = vrot.slane %v405_v36, %v3390_v14  ;;  %v430_v44 = vcombine.high %v406_v37, %v406_v37  ;;  %v437_v45 = vrot.slane %v406_v37, %v3390_v14  ;;  %v408_v0 = vld [vmem:[%s3427_s10 + $0x18] sm:$0xff]  ;;  %4980 = vst [vmem:[#allocation11_spill] sm:$0xff] %v3477_v4  ;;  %s2893_s30 = sshll.u32 %s5262_s16, 1 }
  0x2b   : > { %v447_v11 = vcombine.high %v407_v59, %v407_v59  ;;  %v464_v15 = vcombine.high %v408_v0, %v408_v0  ;;  %v454_v26 = vrot.slane %v407_v59, %v3390_v14  ;;  %v803_v36 = vcombine.high %v643_v9, %v643_v9  ;;  %p4004_p4 = scmp.lt.s32.totalorder %s2893_s30, 15 }
  0x2c   : > { %v427_v51 = vrot.slane %v413_v42, %v3390_v14  ;;  %v428_v52 = vcombine.high %v420_v43, %v420_v43  ;;  %v445_v53 = vcombine.high %v437_v45, %v437_v45  ;;  %v444_v55 = vrot.slane %v430_v44, %v3390_v14  ;;  %s1776_s15 = scalar_select %p1775_p5, 1, 0 }
  0x2d   : > { %v498_v61 = vsel %vm497_vm1, %v420_v43, -inf  ;;  %v526_v7 = vsel %vm497_vm1, %v437_v45, -inf  ;;  %v3490_v43 = vrot.slane %v786_v58, %v3390_v14  ;;  %v461_v44 = vrot.slane %v447_v11, %v3390_v14  ;;  %s5264_s30 = smov (!%p4004_p4, %s2893_s30), 15 }
  0x2e   : > { %v429_v60 = vcombine.high %v427_v51, %v427_v51  ;;  %v505_v62 = vsel %vm497_vm1, %v428_v52, -inf  ;;  %v499_v1 = vrot.slane %v498_v61, 4  ;;  %v512_v5 = vsel %vm497_vm1, %v427_v51, -inf  ;;  %s2894_s9 = sshll.u32 %s5264_s30, 1 }
  0x2f   : > { %v506_v2 = vrot.slane %v505_v62, 4  ;;  %v533_v8 = vsel %vm497_vm1, %v445_v53, -inf  ;;  %v446_v10 = vcombine.high %v444_v55, %v444_v55  ;;  %v513_v16 = vrot.slane %v512_v5, 4  ;;  %s395_s10 = sadd.s32 %s2894_s9, %s3377_s27  ;;  %s4799_s9 = sand.u32 1, %s3228_s19  }
  0x30   : > { %v519_v6 = vsel %vm497_vm1, %v429_v60, -inf  ;;  %v500_v12 = vmax.f32 %v498_v61, %v499_v1  ;;  %v527_v29 = vrot.slane %v526_v7, 4  ;;  %v534_v31 = vrot.slane %v533_v8, 4  ;;  %v3500_v60 = vld [vmem:[%s3384_s14 + $0x48] sm:$0xff]  ;;  %s2896_s27 = sshll.u32 %s395_s10, 3  ;;  %s2880_s10 = sshll.u32 %s4799_s9, 4 }
  0x31   : > { %v507_v13 = vmax.f32 %v505_v62, %v506_v2  ;;  %v520_v18 = vrot.slane %v519_v6, 4  ;;  %v540_v45 = vsel %vm497_vm1, %v444_v55, -inf  ;;  %v547_v46 = vsel %vm497_vm1, %v446_v10, -inf  ;;  %s1780_s16 = scalar_select %p1779_p6, 1, 0 }
  0x32   : > { %v501_v37 = vrot.slane %v500_v12, 2  ;;  %v471_v51 = vrot.slane %v408_v0, %v3390_v14  ;;  %v478_v52 = vrot.slane %v464_v15, %v3390_v14  ;;  %v514_v53 = vmax.f32 %v512_v5, %v513_v16  ;;  %s346_s13 = scalar_lea.vmem [#allocation2], %s2880_s10  ;;  %s3256_s10 = smov [#allocation2]  }
  0x33   : > { %v508_v40 = vrot.slane %v507_v13, 2  ;;  %v521_v59 = vmax.f32 %v519_v6, %v520_v18  ;;  %v462_v61 = vcombine.high %v454_v26, %v454_v26  ;;  %v528_v58 = vmax.f32 %v526_v7, %v527_v29 }
  0x34   : > { %v535_v62 = vmax.f32 %v533_v8, %v534_v31  ;;  %v3503_v1 = vrot.slane %v643_v9, %v3390_v14  ;;  %v3505_v55 = vmax.f32 %v500_v12, %v501_v37  ;;  %v541_v10 = vrot.slane %v540_v45, 4 }
  0x35   : > { %v3507_v2 = vmax.f32 %v507_v13, %v508_v40  ;;  %v548_v11 = vrot.slane %v547_v46, 4  ;;  %v463_v50 = vcombine.high %v461_v44, %v461_v44  ;;  %v3512_v5 = vrot.slane %v803_v36, %v3390_v14 }
  0x36   : > { %v479_v7 = vcombine.high %v471_v51, %v471_v51  ;;  %v480_v8 = vcombine.high %v478_v52, %v478_v52  ;;  %v515_v9 = vrot.slane %v514_v53, 2  ;;  %v522_v15 = vrot.slane %v521_v59, 2 }
  0x37   : > { %v529_v12 = vrot.slane %v528_v58, 2  ;;  %v536_v16 = vrot.slane %v535_v62, 2  ;;  %v554_v13 = vsel %vm497_vm1, %v454_v26, -inf  ;;  %v561_v18 = vsel %vm497_vm1, %v462_v61, -inf }
  0x38   : > { %v503_v29 = vrot.slane %v3505_v55, 1  ;;  %v542_v37 = vmax.f32 %v540_v45, %v541_v10  ;;  %v549_v36 = vmax.f32 %v547_v46, %v548_v11  ;;  %v555_v40 = vrot.slane %v554_v13, 4 }
  0x39   : > { %v562_v0 = vrot.slane %v561_v18, 4  ;;  %v568_v19 = vsel %vm497_vm1, %v461_v44, -inf  ;;  %v575_v42 = vsel %vm497_vm1, %v463_v50, -inf  ;;  %v516_v57 = vmax.f32 %v514_v53, %v515_v9 }
  0x3a   : > { %v523_v3 = vmax.f32 %v521_v59, %v522_v15  ;;  %v569_v49 = vrot.slane %v568_v19, 4  ;;  %v576_v47 = vrot.slane %v575_v42, 4  ;;  %v556_v35 = vmax.f32 %v554_v13, %v555_v40 }
  0x3b   : > { %v563_v26 = vmax.f32 %v561_v18, %v562_v0  ;;  %v582_v61 = vsel %vm497_vm1, %v471_v51, -inf  ;;  %v589_v39 = vsel %vm497_vm1, %v479_v7, -inf  ;;  %v596_v44 = vsel %vm497_vm1, %v478_v52, -inf }
  0x3c   : > { %v570_v34 = vmax.f32 %v568_v19, %v569_v49  ;;  %v577_v38 = vmax.f32 %v575_v42, %v576_v47  ;;  %v583_v45 = vrot.slane %v582_v61, 4  ;;  %v590_v46 = vrot.slane %v589_v39, 4 }
  0x3d   : > { %v557_v10 = vrot.slane %v556_v35, 2  ;;  %v564_v11 = vrot.slane %v563_v26, 2  ;;  %v603_v50 = vsel %vm497_vm1, %v480_v8, -inf  ;;  %v543_v13 = vrot.slane %v542_v37, 2 }
  0x3e   : > { %v571_v53 = vrot.slane %v570_v34, 2  ;;  %v578_v59 = vrot.slane %v577_v38, 2  ;;  %v584_v9 = vmax.f32 %v582_v61, %v583_v45  ;;  %v591_v15 = vmax.f32 %v589_v39, %v590_v46 }
  0x3f   : > { %v550_v0 = vrot.slane %v549_v36, 2  ;;  %v597_v18 = vrot.slane %v596_v44, 4  ;;  %v604_v51 = vrot.slane %v603_v50, 4  ;;  %v558_v40 = vmax.f32 %v556_v35, %v557_v10 }
  0x40   : > { %v565_v7 = vmax.f32 %v563_v26, %v564_v11  ;;  %v585_v49 = vrot.slane %v584_v9, 2  ;;  %v592_v47 = vrot.slane %v591_v15, 2  ;;  %v572_v19 = vmax.f32 %v570_v34, %v571_v53 }
  0x41   : > { %v579_v42 = vmax.f32 %v577_v38, %v578_v59  ;;  %v598_v33 = vmax.f32 %v596_v44, %v597_v18  ;;  %v605_v32 = vmax.f32 %v603_v50, %v604_v51  ;;  %v530_v52 = vmax.f32 %v528_v58, %v529_v12 }
  0x42   : > { %v537_v27 = vmax.f32 %v535_v62, %v536_v16  ;;  %v586_v8 = vmax.f32 %v584_v9, %v585_v49  ;;  %v593_v6 = vmax.f32 %v591_v15, %v592_v47  ;;  %v544_v31 = vmax.f32 %v542_v37, %v543_v13 }
  0x43   : > { %v551_v61 = vmax.f32 %v549_v36, %v550_v0  ;;  %v599_v39 = vrot.slane %v598_v33, 2  ;;  %v606_v45 = vrot.slane %v605_v32, 2  ;;  %v517_v46 = vrot.slane %v516_v57, 1 }
  0x44   : > { %v524_v63 = vrot.slane %v523_v3, 1  ;;  %v559_v4 = vrot.slane %v558_v40, 1  ;;  %v566_v35 = vrot.slane %v565_v7, 1  ;;  %v573_v26 = vrot.slane %v572_v19, 1 }
  0x45   : > { %v580_v10 = vrot.slane %v579_v42, 1  ;;  %v600_v11 = vmax.f32 %v598_v33, %v599_v39  ;;  %v607_v54 = vmax.f32 %v605_v32, %v606_v45  ;;  %v531_v34 = vrot.slane %v530_v52, 1 }
  0x46   : > { %v538_v38 = vrot.slane %v537_v27, 1  ;;  %v587_v44 = vrot.slane %v586_v8, 1  ;;  %v594_v50 = vrot.slane %v593_v6, 1  ;;  %v504_v58 = vmax.f32 %v3505_v55, %v503_v29 }
  0x47   : > { %v545_v62 = vrot.slane %v544_v31, 1  ;;  %v552_v12 = vrot.slane %v551_v61, 1  ;;  %v601_v16 = vrot.slane %v600_v11, 1  ;;  %v4981_v37 = vrot.slane %v3507_v2, 1 }
  0x48   : > { %v560_v53 = vmax.f32 %v558_v40, %v559_v4  ;;  %v567_v59 = vmax.f32 %v565_v7, %v566_v35  ;;  %v608_v9 = vrot.slane %v607_v54, 1  ;;  %v518_v15 = vmax.f32 %v516_v57, %v517_v46 }
  0x49   : > { %v511_v36 = vmax.f32 %v3507_v2, %v4981_v37  ;;  %v525_v13 = vmax.f32 %v523_v3, %v524_v63  ;;  %v574_v33 = vmax.f32 %v572_v19, %v573_v26  ;;  %v581_v32 = vmax.f32 %v579_v42, %v580_v10  ;;  %v646_v10 = vld [vmem:[%s3384_s14 + $0x58] sm:$0xff] }
  0x4a   : > { %v532_v0 = vmax.f32 %v530_v52, %v531_v34  ;;  %v539_v18 = vmax.f32 %v537_v27, %v538_v38  ;;  %v588_v51 = vmax.f32 %v586_v8, %v587_v44  ;;  %v595_v49 = vmax.f32 %v593_v6, %v594_v50  ;;  %v645_v8 = vld [vmem:[%s3384_s14 + $0x50] sm:$0xff]  ;;  %v650_v38 = vld [vmem:[%s3384_s14 + $0x78] sm:$0xff] }
  0x4b   : > { %v546_v47 = vmax.f32 %v544_v31, %v545_v62  ;;  %v553_v55 = vmax.f32 %v551_v61, %v552_v12  ;;  %v602_v29 = vmax.f32 %v600_v11, %v601_v16  ;;  %v3531_v39 = vsel %vm610_vm2, %v504_v58, -inf  ;;  %v647_v12 = vld [vmem:[%s3384_s14 + $0x60] sm:$0xff] }
  0x4c   : > { %4982 = vst [vmem:[#allocation12_spill] sm:$0xff] %v3531_v39  ;;  %v609_v45 = vmax.f32 %v607_v54, %v608_v9  ;;  %v3534_v4 = vsel %vm610_vm2, %v560_v53, -inf  ;;  %v3537_v57 = vsel %vm610_vm2, %v511_v36, -inf  ;;  %v3540_v63 = vsel %vm610_vm2, %v567_v59, -inf }
  0x4d   : > { %4983 = vst [vmem:[#allocation13_spill] sm:$0xff] %v3534_v4  ;;  %4984 = vst [vmem:[#allocation14_spill] sm:$0xff] %v3537_v57  ;;  %v3543_v27 = vsel %vm610_vm2, %v518_v15, -inf  ;;  %v3546_v3 = vsel %vm610_vm2, %v574_v33, -inf  ;;  %v3549_v2 = vsel %vm610_vm2, %v525_v13, -inf  ;;  %v3552_v54 = vsel %vm610_vm2, %v581_v32, -inf }
  0x4e   : > { %4985 = vst [vmem:[#allocation15_spill] sm:$0xff] %v3540_v63  ;;  %4986 = vst [vmem:[#allocation16_spill] sm:$0xff] %v3543_v27  ;;  %v3555_v6 = vsel %vm610_vm2, %v532_v0, -inf  ;;  %v3558_v31 = vsel %vm610_vm2, %v588_v51, -inf  ;;  %v3561_v40 = vsel %vm610_vm2, %v539_v18, -inf  ;;  %v3564_v7 = vsel %vm610_vm2, %v595_v49, -inf }
  0x4f   : > { %4987 = vst [vmem:[#allocation17_spill] sm:$0xff] %v3546_v3  ;;  %4988 = vst [vmem:[#allocation18_spill] sm:$0xff] %v3549_v2  ;;  %v3569_v42 = vsel %vm610_vm2, %v546_v47, -inf  ;;  %v3572_v52 = vsel %vm610_vm2, %v602_v29, -inf  ;;  %v3577_v61 = vrot.slane %v3500_v60, %v3390_v14  ;;  %v3582_v35 = vsel %vm610_vm2, %v553_v55, -inf  ;;  %v648_v15 = vld [vmem:[%s3384_s14 + $0x68] sm:$0xff] }
  0x50   : > { %4989 = vst [vmem:[#allocation19_spill] sm:$0xff] %v3552_v54  ;;  %4990 = vst [vmem:[#allocation20_spill] sm:$0xff] %v3555_v6  ;;  %v3585_v26 = vsel %vm610_vm2, %v609_v45, -inf  ;;  %v4998_v11 = vcombine.high %v3500_v60, %v3500_v60  ;;  %v837_v16 = vcombine.high %v645_v8, %v645_v8  ;;  %v3608_v37 = vrot.slane %v645_v8, %v3390_v14  ;;  %v649_v29 = vld [vmem:[%s3384_s14 + $0x70] sm:$0xff]  ;;  %s4205_s14 = scalar_lea.vmem %s4902_s2, %s2896_s27  ;;  %s2928_s27 = sshll.u32 %s3240_s22, 3 }
  0x51   : > { %4991 = vst [vmem:[#allocation21_spill] sm:$0xff] %v3558_v31  ;;  %4992 = vst [vmem:[#allocation22_spill] sm:$0xff] %v3561_v40  ;;  %v854_v59 = vcombine.high %v646_v10, %v646_v10  ;;  %v3615_v9 = vrot.slane %v646_v10, %v3390_v14  ;;  %v1003_v0 = vsel %vm497_vm1, %v3393_v17, -inf  ;;  %v871_v18 = vcombine.high %v647_v12, %v647_v12  ;;  %s2690_s12 = sadd.s32 %s2928_s27, %s3374_s17  ;;  %s3134_s27 = sshll.u32 %s3256_s10, 4  ;;  %s3135_s27 = int_to_ptr.vmem [resolvable:$false] %s3134_s27 }
  0x52   : > { %4993 = vst [vmem:[#allocation23_spill] sm:$0xff] %v3564_v7  ;;  %4994 = vst [vmem:[#allocation24_spill] sm:$0xff] %v3569_v42  ;;  %v3592_v34 = vrot.slane %v4998_v11, %v3390_v14  ;;  %v3627_v51 = vrot.slane %v647_v12, %v3390_v14  ;;  %v1004_v49 = vrot.slane %v1003_v0, 4  ;;  %v4999_v47 = vcombine.high %v3393_v17, %v3393_v17 }
  0x53   : > { %4995 = vst [vmem:[#allocation25_spill] sm:$0xff] %v3572_v52  ;;  %4996 = vst [vmem:[#allocation26_spill] sm:$0xff] %v3582_v35  ;;  %v3635_v45 = vrot.slane %v837_v16, %v3390_v14  ;;  %v1017_v11 = vsel %vm497_vm1, %v3397_v20, -inf  ;;  %v3642_v12 = vrot.slane %v854_v59, %v3390_v14  ;;  %v888_v17 = vcombine.high %v648_v15, %v648_v15 }
  0x54   : > { %4997 = vst [vmem:[#allocation27_spill] sm:$0xff] %v3585_v26  ;;  %v1010_v55 = vsel %vm497_vm1, %v4999_v47, -inf  ;;  %v5000_v47 = vcombine.high %v3397_v20, %v3397_v20  ;;  %v1005_v62 = vmax.f32 %v1003_v0, %v1004_v49  ;;  %v1018_v58 = vrot.slane %v1017_v11, 4 }
  0x55   : > { %v1011_v10 = vrot.slane %v1010_v55, 4  ;;  %v1031_v50 = vsel %vm497_vm1, %v3400_v21, -inf  ;;  %v5001_v44 = vcombine.high %v3400_v21, %v3400_v21  ;;  %v3658_v46 = vrot.slane %v871_v18, %v3390_v14 }
  0x56   : > { %v1024_v16 = vsel %vm497_vm1, %v5000_v47, -inf  ;;  %v905_v20 = vcombine.high %v649_v29, %v649_v29  ;;  %v1032_v0 = vrot.slane %v1031_v50, 4  ;;  %v1045_v8 = vsel %vm497_vm1, %v3409_v24, -inf }
  0x57   : > { %v1038_v59 = vsel %vm497_vm1, %v5001_v44, -inf  ;;  %v1012_v36 = vmax.f32 %v1010_v55, %v1011_v10  ;;  %v1025_v47 = vrot.slane %v1024_v16, 4  ;;  %v3669_v18 = vrot.slane %v648_v15, %v3390_v14 }
  0x58   : > { %v1039_v49 = vrot.slane %v1038_v59, 4  ;;  %v3672_v32 = vrot.slane %v649_v29, %v3390_v14  ;;  %v922_v19 = vcombine.high %v650_v38, %v650_v38  ;;  %v1006_v55 = vrot.slane %v1005_v62, 2 }
  0x59   : > { %v1019_v10 = vmax.f32 %v1017_v11, %v1018_v58  ;;  %v5002_v33 = vcombine.high %v3409_v24, %v3409_v24  ;;  %v3679_v53 = vrot.slane %v888_v17, %v3390_v14  ;;  %v3682_v21 = vrot.slane %v905_v20, %v3390_v14 }
  0x5a   : > { %v3685_v15 = vrot.slane %v650_v38, %v3390_v14  ;;  %v1046_v44 = vrot.slane %v1045_v8, 4  ;;  %v1013_v29 = vrot.slane %v1012_v36, 2  ;;  %v1026_v60 = vmax.f32 %v1024_v16, %v1025_v47 }
  0x5b   : > { %v1052_v13 = vsel %vm497_vm1, %v5002_v33, -inf  ;;  %v1033_v26 = vmax.f32 %v1031_v50, %v1032_v0  ;;  %v1040_v35 = vmax.f32 %v1038_v59, %v1039_v49  ;;  %v3696_v38 = vrot.slane %v922_v19, %v3390_v14 }
  0x5c   : > { %v1053_v11 = vrot.slane %v1052_v13, 4  ;;  %v1007_v20 = vmax.f32 %v1005_v62, %v1006_v55  ;;  %v1020_v16 = vrot.slane %v1019_v10, 2  ;;  %v1047_v47 = vmax.f32 %v1045_v8, %v1046_v44 }
  0x5d   : > { %v1059_v0 = vsel %vm497_vm1, %v3403_v22, -inf  ;;  %v1014_v49 = vmax.f32 %v1012_v36, %v1013_v29  ;;  %v1027_v33 = vrot.slane %v1026_v60, 2  ;;  %v1034_v24 = vrot.slane %v1033_v26, 2 }
  0x5e   : > { %v1041_v58 = vrot.slane %v1040_v35, 2  ;;  %v1054_v17 = vmax.f32 %v1052_v13, %v1053_v11  ;;  %v1060_v52 = vrot.slane %v1059_v0, 4  ;;  %v5003_v19 = vcombine.high %v3403_v22, %v3403_v22 }
  0x5f   : > { %v1073_v55 = vsel %vm497_vm1, %v3412_v25, -inf  ;;  %v1008_v44 = vrot.slane %v1007_v20, 1  ;;  %v1021_v59 = vmax.f32 %v1019_v10, %v1020_v16  ;;  %v1048_v36 = vrot.slane %v1047_v47, 2 }
  0x60   : > { %v1066_v62 = vsel %vm497_vm1, %v5003_v19, -inf  ;;  %v1074_v29 = vrot.slane %v1073_v55, 4  ;;  %v5004_v13 = vcombine.high %v3412_v25, %v3412_v25  ;;  %v1087_v22 = vsel %vm497_vm1, %v3406_v23, -inf }
  0x61   : > { %v1067_v50 = vrot.slane %v1066_v62, 4  ;;  %v1015_v19 = vrot.slane %v1014_v49, 1  ;;  %v1028_v42 = vmax.f32 %v1026_v60, %v1027_v33  ;;  %v1035_v7 = vmax.f32 %v1033_v26, %v1034_v24 }
  0x62   : > { %v1080_v11 = vsel %vm497_vm1, %v5004_v13, -inf  ;;  %v5005_v40 = vcombine.high %v3406_v23, %v3406_v23  ;;  %v1042_v10 = vmax.f32 %v1040_v35, %v1041_v58  ;;  %v1055_v16 = vrot.slane %v1054_v17, 2 }
  0x63   : > { %v1061_v31 = vmax.f32 %v1059_v0, %v1060_v52  ;;  %v1081_v6 = vrot.slane %v1080_v11, 4  ;;  %v1022_v54 = vrot.slane %v1021_v59, 1  ;;  %v1068_v2 = vmax.f32 %v1066_v62, %v1067_v50 }
  0x64   : > { %v1094_v8 = vsel %vm497_vm1, %v5005_v40, -inf  ;;  %v1088_v25 = vrot.slane %v1087_v22, 4  ;;  %v1101_v13 = vsel %vm497_vm1, %v3419_v28, -inf  ;;  %v3724_v3 = vmax.f32 %v1007_v20, %v1008_v44 }
  0x65   : > { %v1049_v27 = vmax.f32 %v1047_v47, %v1048_v36  ;;  %v1075_v60 = vmax.f32 %v1073_v55, %v1074_v29  ;;  %v1095_v26 = vrot.slane %v1094_v8, 4  ;;  %v1029_v24 = vrot.slane %v1028_v42, 1 }
  0x66   : > { %v1036_v33 = vrot.slane %v1035_v7, 1  ;;  %v1102_v23 = vrot.slane %v1101_v13, 4  ;;  %v5006_v40 = vcombine.high %v3419_v28, %v3419_v28  ;;  %v1043_v35 = vrot.slane %v1042_v10, 1 }
  0x67   : > { %v1056_v58 = vmax.f32 %v1054_v17, %v1055_v16  ;;  %v1062_v50 = vrot.slane %v1061_v31, 2  ;;  %v1082_v0 = vmax.f32 %v1080_v11, %v1081_v6  ;;  %v3730_v62 = vmax.f32 %v1014_v49, %v1015_v19 }
  0x68   : > { %v1108_v52 = vsel %vm497_vm1, %v5006_v40, -inf  ;;  %v3732_v63 = vmax.f32 %v1021_v59, %v1022_v54  ;;  %v1069_v20 = vrot.slane %v1068_v2, 2  ;;  %v1089_v47 = vmax.f32 %v1087_v22, %v1088_v25 }
  0x69   : > { %v1050_v55 = vrot.slane %v1049_v27, 1  ;;  %v1076_v44 = vrot.slane %v1075_v60, 2  ;;  %v1096_v36 = vmax.f32 %v1094_v8, %v1095_v26  ;;  %v1109_v29 = vrot.slane %v1108_v52, 4 }
  0x6a   : > { %v3734_v57 = vmax.f32 %v1028_v42, %v1029_v24  ;;  %v3736_v4 = vmax.f32 %v1035_v7, %v1036_v33  ;;  %v1103_v28 = vmax.f32 %v1101_v13, %v1102_v23  ;;  %v1115_v17 = vsel %vm497_vm1, %v3422_v30, -inf }
  0x6b   : > { %v3740_v16 = vmax.f32 %v1042_v10, %v1043_v35  ;;  %v1057_v6 = vrot.slane %v1056_v58, 1  ;;  %v1063_v49 = vmax.f32 %v1061_v31, %v1062_v50  ;;  %v1083_v54 = vrot.slane %v1082_v0, 2 }
  0x6c   : > { %v1070_v59 = vmax.f32 %v1068_v2, %v1069_v20  ;;  %v1090_v11 = vrot.slane %v1089_v47, 2  ;;  %v1116_v22 = vrot.slane %v1115_v17, 4  ;;  %v5008_v8 = vcombine.high %v3422_v30, %v3422_v30 }
  0x6d   : > { %5007 = vst [vmem:[#allocation28_spill] sm:$0xff] %v3740_v16  ;;  %v3746_v19 = vmax.f32 %v1049_v27, %v1050_v55  ;;  %v1077_v7 = vmax.f32 %v1075_v60, %v1076_v44  ;;  %v1097_v25 = vrot.slane %v1096_v36, 2  ;;  %v1110_v13 = vmax.f32 %v1108_v52, %v1109_v29 }
  0x6e   : > { %v1122_v42 = vsel %vm497_vm1, %v5008_v8, -inf  ;;  %v1104_v26 = vrot.slane %v1103_v28, 2  ;;  %v1117_v24 = vmax.f32 %v1115_v17, %v1116_v22  ;;  %v1129_v31 = vsel %vm497_vm1, %v3453_v48, -inf }
  0x6f   : > { %5009 = vst [vmem:[#allocation29_spill] sm:$0xff] %v3746_v19  ;;  %v1123_v10 = vrot.slane %v1122_v42, 4  ;;  %v1064_v33 = vrot.slane %v1063_v49, 1  ;;  %v1084_v2 = vmax.f32 %v1082_v0, %v1083_v54  ;;  %v1130_v23 = vrot.slane %v1129_v31, 4 }
  0x70   : > { %v5010_v40 = vcombine.high %v3453_v48, %v3453_v48  ;;  %v3754_v35 = vmax.f32 %v1056_v58, %v1057_v6  ;;  %v1071_v27 = vrot.slane %v1070_v59, 1  ;;  %v1091_v60 = vmax.f32 %v1089_v47, %v1090_v11 }
  0x71   : > { %v1143_v52 = vsel %vm497_vm1, %v3445_v41, -inf  ;;  %v1098_v50 = vmax.f32 %v1096_v36, %v1097_v25  ;;  %v1111_v20 = vrot.slane %v1110_v13, 2  ;;  %v5012_v44 = vcombine.high %v3445_v41, %v3445_v41 }
  0x72   : > { %v1136_v30 = vsel %vm497_vm1, %v5010_v40, -inf  ;;  %5011 = vst [vmem:[#allocation30_spill] sm:$0xff] %v3754_v35  ;;  %v1078_v29 = vrot.slane %v1077_v7, 1  ;;  %v1105_v17 = vmax.f32 %v1103_v28, %v1104_v26  ;;  %v1118_v48 = vrot.slane %v1117_v24, 2 }
  0x73   : > { %v1137_v55 = vrot.slane %v1136_v30, 4  ;;  %v1150_v0 = vsel %vm497_vm1, %v5012_v44, -inf  ;;  %v1124_v54 = vmax.f32 %v1122_v42, %v1123_v10  ;;  %v3762_v22 = vmax.f32 %v1063_v49, %v1064_v33 }
  0x74   : > { %v1085_v58 = vrot.slane %v1084_v2, 1  ;;  %v1131_v6 = vmax.f32 %v1129_v31, %v1130_v23  ;;  %v1144_v47 = vrot.slane %v1143_v52, 4  ;;  %v3764_v11 = vmax.f32 %v1070_v59, %v1071_v27 }
  0x75   : > { %v1092_v8 = vrot.slane %v1091_v60, 1  ;;  %v1151_v36 = vrot.slane %v1150_v0, 4  ;;  %v1157_v25 = vsel %vm497_vm1, %v3463_v56, -inf  ;;  %v1099_v40 = vrot.slane %v1098_v50, 1 }
  0x76   : > { %v1112_v41 = vmax.f32 %v1110_v13, %v1111_v20  ;;  %v1138_v39 = vmax.f32 %v1136_v30, %v1137_v55  ;;  %v5013_v28 = vcombine.high %v3463_v56, %v3463_v56  ;;  %v3772_v49 = vmax.f32 %v1077_v7, %v1078_v29  ;;  %v5015_v30 = vld [vmem:[#allocation9_spill] sm:$0xff] }
  0x77   : > { %v1106_v26 = vrot.slane %v1105_v17, 1  ;;  %v1119_v10 = vmax.f32 %v1117_v24, %v1118_v48  ;;  %v1125_v31 = vrot.slane %v1124_v54, 2  ;;  %v3774_v59 = vmax.f32 %v1084_v2, %v1085_v58 }
  0x78   : > { %v1164_v42 = vsel %vm497_vm1, %v5013_v28, -inf  ;;  %v1132_v33 = vrot.slane %v1131_v6, 2  ;;  %v1145_v23 = vmax.f32 %v1143_v52, %v1144_v47  ;;  %v1158_v27 = vrot.slane %v1157_v25, 4 }
  0x79   : > { %v3776_v44 = vmax.f32 %v1091_v60, %v1092_v8  ;;  %v1152_v14 = vmax.f32 %v1150_v0, %v1151_v36  ;;  %v1165_v13 = vrot.slane %v1164_v42, 4  ;;  %v1171_v20 = vsel %vm497_vm1, %v5015_v30, -inf }
  0x7a   : > { %v3780_v56 = vmax.f32 %v1098_v50, %v1099_v40  ;;  %v1113_v55 = vrot.slane %v1112_v41, 1  ;;  %v1139_v7 = vrot.slane %v1138_v39, 2  ;;  %v1172_v29 = vrot.slane %v1171_v20, 4  ;;  %v5019_v50 = vld [vmem:[#allocation11_spill] sm:$0xff] }
  0x7b   : > { %5014 = vst [vmem:[#allocation31_spill] sm:$0xff] %v3776_v44  ;;  %v3782_v28 = vmax.f32 %v1105_v17, %v1106_v26  ;;  %v1120_v24 = vrot.slane %v1119_v10, 1  ;;  %v1126_v2 = vmax.f32 %v1124_v54, %v1125_v31  ;;  %v5018_v52 = vcombine.high %v5015_v30, %v5015_v30 }
  0x7c   : > { %5016 = vst [vmem:[#allocation9_spill] sm:$0xff] %v3780_v56  ;;  %v1133_v48 = vmax.f32 %v1131_v6, %v1132_v33  ;;  %v1146_v0 = vrot.slane %v1145_v23, 2  ;;  %v1159_v58 = vmax.f32 %v1157_v25, %v1158_v27  ;;  %v1153_v8 = vrot.slane %v1152_v14, 2  ;;  %v5023_v33 = vld [vmem:[#allocation10_spill] sm:$0xff] }
  0x7d   : > { %5017 = vst [vmem:[#allocation32_spill] sm:$0xff] %v3782_v28  ;;  %v1178_v60 = vsel %vm497_vm1, %v5018_v52, -inf  ;;  %v1166_v36 = vmax.f32 %v1164_v42, %v1165_v13  ;;  %v1185_v40 = vsel %vm497_vm1, %v5019_v50, -inf  ;;  %v5020_v17 = vcombine.high %v5019_v50, %v5019_v50 }
  0x7e   : > { %v1179_v47 = vrot.slane %v1178_v60, 4  ;;  %v3794_v54 = vmax.f32 %v1112_v41, %v1113_v55  ;;  %v1140_v31 = vmax.f32 %v1138_v39, %v1139_v7  ;;  %v1173_v30 = vmax.f32 %v1171_v20, %v1172_v29 }
  0x7f   : > { %v1192_v26 = vsel %vm497_vm1, %v5020_v17, -inf  ;;  %v1186_v35 = vrot.slane %v1185_v40, 4  ;;  %v3796_v52 = vmax.f32 %v1119_v10, %v1120_v24  ;;  %v1127_v6 = vrot.slane %v1126_v2, 1 }
  0x80   : > { %5021 = vst [vmem:[#allocation11_spill] sm:$0xff] %v3794_v54  ;;  %v1193_v25 = vrot.slane %v1192_v26, 4  ;;  %v1199_v42 = vsel %vm497_vm1, %v5023_v33, -inf  ;;  %v1134_v27 = vrot.slane %v1133_v48, 1  ;;  %v1147_v13 = vmax.f32 %v1145_v23, %v1146_v0 }
  0x81   : > { %5022 = vst [vmem:[#allocation33_spill] sm:$0xff] %v3796_v52  ;;  %v1180_v28 = vmax.f32 %v1178_v60, %v1179_v47  ;;  %v5024_v50 = vcombine.high %v5023_v33, %v5023_v33  ;;  %v1154_v41 = vmax.f32 %v1152_v14, %v1153_v8  ;;  %v1160_v55 = vrot.slane %v1159_v58, 2 }
  0x82   : > { %v1167_v39 = vrot.slane %v1166_v36, 2  ;;  %v1213_v10 = vsel %vm497_vm1, %v3490_v43, -inf  ;;  %v1141_v20 = vrot.slane %v1140_v31, 1  ;;  %v1174_v7 = vrot.slane %v1173_v30, 2 }
  0x83   : > { %v1206_v17 = vsel %vm497_vm1, %v5024_v50, -inf  ;;  %v1187_v29 = vmax.f32 %v1185_v40, %v1186_v35  ;;  %v1200_v24 = vrot.slane %v1199_v42, 4  ;;  %v1194_v52 = vmax.f32 %v1192_v26, %v1193_v25 }
  0x84   : > { %v1207_v54 = vrot.slane %v1206_v17, 4  ;;  %v1214_v19 = vrot.slane %v1213_v10, 4  ;;  %v5025_v23 = vcombine.high %v3490_v43, %v3490_v43  ;;  %v3810_v0 = vmax.f32 %v1126_v2, %v1127_v6 }
  0x85   : > { %v3812_v14 = vmax.f32 %v1133_v48, %v1134_v27  ;;  %v1148_v47 = vrot.slane %v1147_v13, 1  ;;  %v1181_v8 = vrot.slane %v1180_v28, 2  ;;  %v1155_v33 = vrot.slane %v1154_v41, 1 }
  0x86   : > { %v1220_v60 = vsel %vm497_vm1, %v5025_v23, -inf  ;;  %v1161_v50 = vmax.f32 %v1159_v58, %v1160_v55  ;;  %v1168_v56 = vmax.f32 %v1166_v36, %v1167_v39  ;;  %v3814_v35 = vmax.f32 %v1140_v31, %v1141_v20 }
  0x87   : > { %v1221_v16 = vrot.slane %v1220_v60, 4  ;;  %v1188_v40 = vrot.slane %v1187_v29, 2  ;;  %v1201_v26 = vmax.f32 %v1199_v42, %v1200_v24  ;;  %v1227_v25 = vsel %vm497_vm1, %v3503_v1, -inf }
  0x88   : > { %v1175_v43 = vmax.f32 %v1173_v30, %v1174_v7  ;;  %v1195_v44 = vrot.slane %v1194_v52, 2  ;;  %v1208_v23 = vmax.f32 %v1206_v17, %v1207_v54  ;;  %v1215_v2 = vmax.f32 %v1213_v10, %v1214_v19 }
  0x89   : > { %v3818_v6 = vmax.f32 %v1147_v13, %v1148_v47  ;;  %v1182_v48 = vmax.f32 %v1180_v28, %v1181_v8  ;;  %v1228_v27 = vrot.slane %v1227_v25, 4  ;;  %v5027_v58 = vcombine.high %v3503_v1, %v3503_v1 }
  0x8a   : > { %v3824_v31 = vmax.f32 %v1154_v41, %v1155_v33  ;;  %v1162_v55 = vrot.slane %v1161_v50, 1  ;;  %v1169_v42 = vrot.slane %v1168_v56, 1  ;;  %v1222_v39 = vmax.f32 %v1220_v60, %v1221_v16 }
  0x8b   : > { %5026 = vst [vmem:[#allocation10_spill] sm:$0xff] %v3818_v6  ;;  %v1234_v36 = vsel %vm497_vm1, %v5027_v58, -inf  ;;  %v1189_v20 = vmax.f32 %v1187_v29, %v1188_v40  ;;  %v1202_v24 = vrot.slane %v1201_v26, 2  ;;  %v1241_v19 = vsel %vm497_vm1, %v3512_v5, -inf }
  0x8c   : > { %5028 = vst [vmem:[#allocation34_spill] sm:$0xff] %v3824_v31  ;;  %v1235_v30 = vrot.slane %v1234_v36, 4  ;;  %v1176_v54 = vrot.slane %v1175_v43, 1  ;;  %v1196_v13 = vmax.f32 %v1194_v52, %v1195_v44  ;;  %v1209_v28 = vrot.slane %v1208_v23, 2 }
  0x8d   : > { %v1216_v17 = vrot.slane %v1215_v2, 2  ;;  %v1183_v10 = vrot.slane %v1182_v48, 1  ;;  %v1229_v7 = vmax.f32 %v1227_v25, %v1228_v27  ;;  %v1242_v1 = vrot.slane %v1241_v19, 4 }
  0x8e   : > { %v5029_v41 = vcombine.high %v3512_v5, %v3512_v5  ;;  %v3832_v8 = vmax.f32 %v1161_v50, %v1162_v55  ;;  %v3834_v16 = vmax.f32 %v1168_v56, %v1169_v42  ;;  %v1223_v29 = vrot.slane %v1222_v39, 2 }
  0x8f   : > { %v1236_v60 = vmax.f32 %v1234_v36, %v1235_v30  ;;  %v1190_v33 = vrot.slane %v1189_v20, 1  ;;  %v1203_v40 = vmax.f32 %v1201_v26, %v1202_v24  ;;  %v1255_v44 = vsel %vm497_vm1, %v3577_v61, -inf }
  0x90   : > { %v1248_v47 = vsel %vm497_vm1, %v5029_v41, -inf  ;;  %5030 = vst [vmem:[#allocation35_spill] sm:$0xff] %v3832_v8  ;;  %5031 = vst [vmem:[#allocation36_spill] sm:$0xff] %v3834_v16  ;;  %v1197_v52 = vrot.slane %v1196_v13, 1  ;;  %v1210_v25 = vmax.f32 %v1208_v23, %v1209_v28  ;;  %v1217_v27 = vmax.f32 %v1215_v2, %v1216_v17 }
  0x91   : > { %v1249_v58 = vrot.slane %v1248_v47, 4  ;;  %v5032_v5 = vcombine.high %v3577_v61, %v3577_v61  ;;  %v3842_v50 = vmax.f32 %v1175_v43, %v1176_v54  ;;  %v3844_v56 = vmax.f32 %v1182_v48, %v1183_v10 }
  0x92   : > { %v1230_v55 = vrot.slane %v1229_v7, 2  ;;  %v1243_v36 = vmax.f32 %v1241_v19, %v1242_v1  ;;  %v1224_v42 = vmax.f32 %v1222_v39, %v1223_v29  ;;  %v1237_v26 = vrot.slane %v1236_v60, 2 }
  0x93   : > { %v1262_v41 = vsel %vm497_vm1, %v5032_v5, -inf  ;;  %v1256_v24 = vrot.slane %v1255_v44, 4  ;;  %v1269_v30 = vsel %vm497_vm1, %v3592_v34, -inf  ;;  %v1204_v16 = vrot.slane %v1203_v40, 1 }
  0x94   : > { %v1250_v23 = vmax.f32 %v1248_v47, %v1249_v58  ;;  %v1263_v2 = vrot.slane %v1262_v41, 4  ;;  %v5033_v61 = vcombine.high %v3592_v34, %v3592_v34  ;;  %v3852_v43 = vmax.f32 %v1189_v20, %v1190_v33 }
  0x95   : > { %v3854_v48 = vmax.f32 %v1196_v13, %v1197_v52  ;;  %v1211_v54 = vrot.slane %v1210_v25, 1  ;;  %v1218_v19 = vrot.slane %v1217_v27, 1  ;;  %v1231_v39 = vmax.f32 %v1229_v7, %v1230_v55 }
  0x96   : > { %v1276_v28 = vsel %vm497_vm1, %v5033_v61, -inf  ;;  %v1244_v17 = vrot.slane %v1243_v36, 2  ;;  %v1270_v10 = vrot.slane %v1269_v30, 4  ;;  %v1283_v1 = vsel %vm497_vm1, %v3608_v37, -inf }
  0x97   : > { %v1225_v29 = vrot.slane %v1224_v42, 1  ;;  %v1238_v47 = vmax.f32 %v1236_v60, %v1237_v26  ;;  %v1257_v58 = vmax.f32 %v1255_v44, %v1256_v24  ;;  %v1277_v5 = vrot.slane %v1276_v28, 4 }
  0x98   : > { %v3858_v8 = vmax.f32 %v1203_v40, %v1204_v16  ;;  %v1251_v34 = vrot.slane %v1250_v23, 2  ;;  %v1264_v61 = vmax.f32 %v1262_v41, %v1263_v2  ;;  %v5034_v20 = vcombine.high %v3608_v37, %v3608_v37 }
  0x99   : > { %v3864_v33 = vmax.f32 %v1210_v25, %v1211_v54  ;;  %v3866_v7 = vmax.f32 %v1217_v27, %v1218_v19  ;;  %v1284_v52 = vrot.slane %v1283_v1, 4  ;;  %v1232_v31 = vrot.slane %v1231_v39, 1 }
  0x9a   : > { %v1290_v13 = vsel %vm497_vm1, %v5034_v20, -inf  ;;  %v1245_v6 = vmax.f32 %v1243_v36, %v1244_v17  ;;  %v1271_v60 = vmax.f32 %v1269_v30, %v1270_v10  ;;  %v1297_v16 = vsel %vm497_vm1, %v3635_v45, -inf }
  0x9b   : > { %5035 = vst [vmem:[#allocation37_spill] sm:$0xff] %v3866_v7  ;;  %v1291_v55 = vrot.slane %v1290_v13, 4  ;;  %v3870_v40 = vmax.f32 %v1224_v42, %v1225_v29  ;;  %v1239_v44 = vrot.slane %v1238_v47, 1  ;;  %v1258_v41 = vrot.slane %v1257_v58, 2 }
  0x9c   : > { %v1278_v26 = vmax.f32 %v1276_v28, %v1277_v5  ;;  %v1252_v37 = vmax.f32 %v1250_v23, %v1251_v34  ;;  %v1265_v24 = vrot.slane %v1264_v61, 2  ;;  %v5037_v25 = vcombine.high %v3635_v45, %v3635_v45 }
  0x9d   : > { %5036 = vst [vmem:[#allocation38_spill] sm:$0xff] %v3870_v40  ;;  %v1311_v2 = vsel %vm497_vm1, %v3615_v9, -inf  ;;  %v1285_v36 = vmax.f32 %v1283_v1, %v1284_v52  ;;  %v1292_v30 = vmax.f32 %v1290_v13, %v1291_v55  ;;  %v1298_v54 = vrot.slane %v1297_v16, 4 }
  0x9e   : > { %v1304_v27 = vsel %vm497_vm1, %v5037_v25, -inf  ;;  %v3878_v17 = vmax.f32 %v1231_v39, %v1232_v31  ;;  %v1246_v42 = vrot.slane %v1245_v6, 1  ;;  %v1272_v10 = vrot.slane %v1271_v60, 2 }
  0x9f   : > { %v1305_v19 = vrot.slane %v1304_v27, 4  ;;  %v5039_v23 = vcombine.high %v3615_v9, %v3615_v9  ;;  %v1259_v29 = vmax.f32 %v1257_v58, %v1258_v41  ;;  %v1279_v45 = vrot.slane %v1278_v26, 2 }
  0xa0   : > { %5038 = vst [vmem:[#allocation39_spill] sm:$0xff] %v3878_v17  ;;  %v1312_v5 = vrot.slane %v1311_v2, 4  ;;  %v3884_v20 = vmax.f32 %v1238_v47, %v1239_v44  ;;  %v1253_v25 = vrot.slane %v1252_v37, 1  ;;  %v1266_v1 = vmax.f32 %v1264_v61, %v1265_v24 }
  0xa1   : > { %v1318_v28 = vsel %vm497_vm1, %v5039_v23, -inf  ;;  %v1325_v13 = vsel %vm497_vm1, %v3642_v12, -inf  ;;  %v1286_v31 = vrot.slane %v1285_v36, 2  ;;  %v1293_v39 = vrot.slane %v1292_v30, 2 }
  0xa2   : > { %v1319_v34 = vrot.slane %v1318_v28, 4  ;;  %5040 = vst [vmem:[#allocation40_spill] sm:$0xff] %v3884_v20  ;;  %v1299_v52 = vmax.f32 %v1297_v16, %v1298_v54  ;;  %v1306_v55 = vmax.f32 %v1304_v27, %v1305_v19  ;;  %v3888_v17 = vmax.f32 %v1245_v6, %v1246_v42 }
  0xa3   : > { %v1273_v9 = vmax.f32 %v1271_v60, %v1272_v10  ;;  %v1326_v40 = vrot.slane %v1325_v13, 4  ;;  %v5042_v58 = vcombine.high %v3642_v12, %v3642_v12  ;;  %v1260_v47 = vrot.slane %v1259_v29, 1 }
  0xa4   : > { %5041 = vst [vmem:[#allocation41_spill] sm:$0xff] %v3888_v17  ;;  %v1280_v44 = vmax.f32 %v1278_v26, %v1279_v45  ;;  %v1313_v23 = vmax.f32 %v1311_v2, %v1312_v5  ;;  %v1320_v61 = vmax.f32 %v1318_v28, %v1319_v34  ;;  %v3894_v24 = vmax.f32 %v1252_v37, %v1253_v25 }
  0xa5   : > { %v1332_v41 = vsel %vm497_vm1, %v5042_v58, -inf  ;;  %v1267_v20 = vrot.slane %v1266_v1, 1  ;;  %v1339_v16 = vsel %vm497_vm1, %v3627_v51, -inf  ;;  %v1287_v6 = vmax.f32 %v1285_v36, %v1286_v31 }
  0xa6   : > { %5043 = vst [vmem:[#allocation42_spill] sm:$0xff] %v3894_v24  ;;  %v1333_v7 = vrot.slane %v1332_v41, 4  ;;  %v1294_v27 = vmax.f32 %v1292_v30, %v1293_v39  ;;  %v1300_v60 = vrot.slane %v1299_v52, 2  ;;  %v1307_v54 = vrot.slane %v1306_v55, 2 }
  0xa7   : > { %v1274_v19 = vrot.slane %v1273_v9, 1  ;;  %v1327_v42 = vmax.f32 %v1325_v13, %v1326_v40  ;;  %v1340_v12 = vrot.slane %v1339_v16, 4  ;;  %v5044_v10 = vcombine.high %v3627_v51, %v3627_v51 }
  0xa8   : > { %v1281_v2 = vrot.slane %v1280_v44, 1  ;;  %v1314_v37 = vrot.slane %v1313_v23, 2  ;;  %v1321_v28 = vrot.slane %v1320_v61, 2  ;;  %v1334_v45 = vmax.f32 %v1332_v41, %v1333_v7 }
  0xa9   : > { %v1346_v26 = vsel %vm497_vm1, %v5044_v10, -inf  ;;  %v3902_v5 = vmax.f32 %v1259_v29, %v1260_v47  ;;  %v3904_v34 = vmax.f32 %v1266_v1, %v1267_v20  ;;  %v1353_v30 = vsel %vm497_vm1, %v3658_v46, -inf  ;;  %v2904_v20 = vld [vmem:[%s4903_s3 + $0x4] sm:$0x3] }
  0xaa   : > { %v1347_v36 = vrot.slane %v1346_v26, 4  ;;  %v1288_v25 = vrot.slane %v1287_v6, 1  ;;  %v1295_v40 = vrot.slane %v1294_v27, 1  ;;  %v1301_v13 = vmax.f32 %v1299_v52, %v1300_v60  ;;  %3017 = vmatprep.subr.msk.bf16.mxu0 %vm2031_vm0, %v2904_v20 }
  0xab   : > { %5045 = vst [vmem:[#allocation43_spill] sm:$0xff] %v3902_v5  ;;  %5046 = vst [vmem:[#allocation44_spill] sm:$0xff] %v3904_v34  ;;  %v1308_v31 = vmax.f32 %v1306_v55, %v1307_v54  ;;  %v3908_v39 = vmax.f32 %v1273_v9, %v1274_v19  ;;  %v1328_v51 = vrot.slane %v1327_v42, 2  ;;  %v1341_v58 = vmax.f32 %v1339_v16, %v1340_v12 }
  0xac   : > { %v1354_v10 = vrot.slane %v1353_v30, 4  ;;  %v3910_v24 = vmax.f32 %v1280_v44, %v1281_v2  ;;  %v1315_v7 = vmax.f32 %v1313_v23, %v1314_v37  ;;  %v1322_v29 = vmax.f32 %v1320_v61, %v1321_v28  ;;  %v2907_v23 = vld [vmem:[%s4903_s3 + $0x6] sm:$0x3] }
  0xad   : > { %5047 = vst [vmem:[#allocation45_spill] sm:$0xff] %v3908_v39  ;;  %v1335_v41 = vrot.slane %v1334_v45, 2  ;;  %v1348_v1 = vmax.f32 %v1346_v26, %v1347_v36  ;;  %v5049_v47 = vcombine.high %v3658_v46, %v3658_v46  ;;  %v1367_v55 = vsel %vm497_vm1, %v3669_v18, -inf  ;;  %3018 = vmatprep.subr.msk.bf16.mxu1 %vm2031_vm0, %v2907_v23 }
  0xae   : > { %5048 = vst [vmem:[#allocation46_spill] sm:$0xff] %v3910_v24  ;;  %v5050_v9 = vcombine.high %v3669_v18, %v3669_v18  ;;  %v3929_v61 = vmax.f32 %v1287_v6, %v1288_v25  ;;  %v3931_v16 = vmax.f32 %v1294_v27, %v1295_v40  ;;  %v1302_v46 = vrot.slane %v1301_v13, 1 }
  0xaf   : > { %v1360_v52 = vsel %vm497_vm1, %v5049_v47, -inf  ;;  %v1309_v60 = vrot.slane %v1308_v31, 1  ;;  %v1329_v54 = vmax.f32 %v1327_v42, %v1328_v51  ;;  %v1342_v19 = vrot.slane %v1341_v58, 2 }
  0xb0   : > { %v1374_v44 = vsel %vm497_vm1, %v5050_v9, -inf  ;;  %5051 = vst [vmem:[#allocation47_spill] sm:$0xff] %v3931_v16  ;;  %v1355_v12 = vmax.f32 %v1353_v30, %v1354_v10  ;;  %v1381_v18 = vsel %vm497_vm1, %v3679_v53, -inf  ;;  %v1316_v26 = vrot.slane %v1315_v7, 1 }
  0xb1   : > { %v1361_v2 = vrot.slane %v1360_v52, 4  ;;  %v1368_v37 = vrot.slane %v1367_v55, 4  ;;  %v1375_v28 = vrot.slane %v1374_v44, 4  ;;  %v1323_v36 = vrot.slane %v1322_v29, 1 }
  0xb2   : > { %v1336_v20 = vmax.f32 %v1334_v45, %v1335_v41  ;;  %v1349_v6 = vrot.slane %v1348_v1, 2  ;;  %v5052_v27 = vcombine.high %v3679_v53, %v3679_v53  ;;  %v3940_v40 = vmax.f32 %v1301_v13, %v1302_v46 }
  0xb3   : > { %v3942_v42 = vmax.f32 %v1308_v31, %v1309_v60  ;;  %v1382_v30 = vrot.slane %v1381_v18, 4  ;;  %v1330_v10 = vrot.slane %v1329_v54, 1  ;;  %v3944_v47 = vmax.f32 %v1341_v58, %v1342_v19 }
  0xb4   : > { %v1388_v25 = vsel %vm497_vm1, %v5052_v27, -inf  ;;  %5053 = vst [vmem:[#allocation48_spill] sm:$0xff] %v3940_v40  ;;  %v1356_v9 = vrot.slane %v1355_v12, 2  ;;  %v1395_v23 = vsel %vm497_vm1, %v3672_v32, -inf  ;;  %v3948_v45 = vmax.f32 %v1315_v7, %v1316_v26 }
  0xb5   : > { %5054 = vst [vmem:[#allocation49_spill] sm:$0xff] %v3942_v42  ;;  %v1389_v51 = vrot.slane %v1388_v25, 4  ;;  %v1362_v41 = vmax.f32 %v1360_v52, %v1361_v2  ;;  %v1369_v53 = vmax.f32 %v1367_v55, %v1368_v37  ;;  %v1376_v24 = vmax.f32 %v1374_v44, %v1375_v28 }
  0xb6   : > { %5055 = vst [vmem:[#allocation50_spill] sm:$0xff] %v3948_v45  ;;  %v3950_v27 = vmax.f32 %v1322_v29, %v1323_v36  ;;  %v1337_v13 = vrot.slane %v1336_v20, 1  ;;  %v1350_v31 = vmax.f32 %v1348_v1, %v1349_v6  ;;  %v5057_v46 = vcombine.high %v3672_v32, %v3672_v32 }
  0xb7   : > { %v1383_v60 = vmax.f32 %v1381_v18, %v1382_v30  ;;  %v1390_v19 = vmax.f32 %v1388_v25, %v1389_v51  ;;  %v1396_v39 = vrot.slane %v1395_v23, 4  ;;  %v3956_v5 = vmax.f32 %v1329_v54, %v1330_v10 }
  0xb8   : > { %5056 = vst [vmem:[#allocation51_spill] sm:$0xff] %v3950_v27  ;;  %v1402_v58 = vsel %vm497_vm1, %v5057_v46, -inf  ;;  %v1344_v7 = vrot.slane %v3944_v47, 1  ;;  %v1357_v52 = vmax.f32 %v1355_v12, %v1356_v9  ;;  %v1409_v29 = vsel %vm497_vm1, %v3682_v21, -inf }
  0xb9   : > { %v1403_v34 = vrot.slane %v1402_v58, 4  ;;  %5058 = vst [vmem:[#allocation52_spill] sm:$0xff] %v3956_v5  ;;  %v1363_v1 = vrot.slane %v1362_v41, 2  ;;  %v1370_v55 = vrot.slane %v1369_v53, 2  ;;  %v1377_v44 = vrot.slane %v1376_v24, 2 }
  0xba   : > { %v1410_v32 = vrot.slane %v1409_v29, 4  ;;  %v3962_v26 = vmax.f32 %v1336_v20, %v1337_v13  ;;  %v1351_v18 = vrot.slane %v1350_v31, 1  ;;  %v5060_v2 = vcombine.high %v3682_v21, %v3682_v21 }
  0xbb   : > { %v1423_v37 = vsel %vm497_vm1, %v3685_v15, -inf  ;;  %v1384_v12 = vrot.slane %v1383_v60, 2  ;;  %v1391_v28 = vrot.slane %v1390_v19, 2  ;;  %v1397_v36 = vmax.f32 %v1395_v23, %v1396_v39 }
  0xbc   : > { %5059 = vst [vmem:[#allocation53_spill] sm:$0xff] %v3962_v26  ;;  %v1416_v54 = vsel %vm497_vm1, %v5060_v2, -inf  ;;  %v1404_v6 = vmax.f32 %v1402_v58, %v1403_v34  ;;  %v1411_v20 = vmax.f32 %v1409_v29, %v1410_v32  ;;  %v1424_v30 = vrot.slane %v1423_v37, 4 }
  0xbd   : > { %v1417_v25 = vrot.slane %v1416_v54, 4  ;;  %v5062_v21 = vcombine.high %v3685_v15, %v3685_v15  ;;  %v1358_v10 = vrot.slane %v1357_v52, 1  ;;  %v1364_v9 = vmax.f32 %v1362_v41, %v1363_v1 }
  0xbe   : > { %v1371_v13 = vmax.f32 %v1369_v53, %v1370_v55  ;;  %v1378_v39 = vmax.f32 %v1376_v24, %v1377_v44  ;;  %v1425_v23 = vmax.f32 %v1423_v37, %v1424_v30  ;;  %v1437_v58 = vsel %vm497_vm1, %v3696_v38, -inf }
  0xbf   : > { %v1430_v51 = vsel %vm497_vm1, %v5062_v21, -inf  ;;  %v1418_v34 = vmax.f32 %v1416_v54, %v1417_v25  ;;  %v1385_v29 = vmax.f32 %v1383_v60, %v1384_v12  ;;  %v1392_v32 = vmax.f32 %v1390_v19, %v1391_v28 }
  0xc0   : > { %v1431_v46 = vrot.slane %v1430_v51, 4  ;;  %v1398_v2 = vrot.slane %v1397_v36, 2  ;;  %v1438_v26 = vrot.slane %v1437_v58, 4  ;;  %v1405_v15 = vrot.slane %v1404_v6, 2 }
  0xc1   : > { %v1412_v21 = vrot.slane %v1411_v20, 2  ;;  %v5063_v24 = vcombine.high %v3696_v38, %v3696_v38  ;;  %v1419_v1 = vrot.slane %v1418_v34, 2  ;;  %v1426_v55 = vrot.slane %v1425_v23, 2 }
  0xc2   : > { %v1432_v41 = vmax.f32 %v1430_v51, %v1431_v46  ;;  %v1439_v44 = vmax.f32 %v1437_v58, %v1438_v26  ;;  %v1365_v19 = vrot.slane %v1364_v9, 1  ;;  %v1372_v54 = vrot.slane %v1371_v13, 1 }
  0xc3   : > { %v1444_v53 = vsel %vm497_vm1, %v5063_v24, -inf  ;;  %v1379_v37 = vrot.slane %v1378_v39, 1  ;;  %v1386_v28 = vrot.slane %v1385_v29, 1  ;;  %v1393_v25 = vrot.slane %v1392_v32, 1 }
  0xc4   : > { %v1445_v60 = vrot.slane %v1444_v53, 4  ;;  %v1433_v12 = vrot.slane %v1432_v41, 2  ;;  %v1440_v30 = vrot.slane %v1439_v44, 2  ;;  %v3994_v51 = vmax.f32 %v3944_v47, %v1344_v7 }
  0xc5   : > { %v1399_v38 = vmax.f32 %v1397_v36, %v1398_v2  ;;  %v1406_v46 = vmax.f32 %v1404_v6, %v1405_v15  ;;  %v1413_v24 = vmax.f32 %v1411_v20, %v1412_v21  ;;  %v3996_v27 = vmax.f32 %v1350_v31, %v1351_v18 }
  0xc6   : > { %v1446_v5 = vmax.f32 %v1444_v53, %v1445_v60  ;;  %v1420_v26 = vmax.f32 %v1418_v34, %v1419_v1  ;;  %v1427_v58 = vmax.f32 %v1425_v23, %v1426_v55  ;;  %v1434_v45 = vmax.f32 %v1432_v41, %v1433_v12  ;;  %v5066_v60 = vld [vmem:[#allocation28_spill] sm:$0xff]  ;;  %v5105_v1 = vld [vmem:[#allocation49_spill] sm:$0xff]  ;;  %v5107_v53 = vld [vmem:[#allocation43_spill] sm:$0xff] }
  0xc7   : > { %v3998_v42 = vmax.f32 %v1357_v52, %v1358_v10  ;;  %v4000_v40 = vmax.f32 %v1364_v9, %v1365_v19  ;;  %v1441_v17 = vmax.f32 %v1439_v44, %v1440_v30  ;;  %v4008_v47 = vmax.f32 %v1371_v13, %v1372_v54  ;;  %v5068_v19 = vld [vmem:[#allocation9_spill] sm:$0xff] }
  0xc8   : > { %v1447_v16 = vrot.slane %v1446_v5, 2  ;;  %v4010_v31 = vmax.f32 %v1378_v39, %v1379_v37  ;;  %v4012_v7 = vmax.f32 %v1385_v29, %v1386_v28  ;;  %v4014_v18 = vmax.f32 %v1392_v32, %v1393_v25  ;;  %v5070_v37 = vld [vmem:[#allocation29_spill] sm:$0xff]  ;;  %v5072_v28 = vld [vmem:[#allocation32_spill] sm:$0xff]  ;;  %v5074_v25 = vld [vmem:[#allocation30_spill] sm:$0xff] }
  0xc9   : > { %v1400_v52 = vrot.slane %v1399_v38, 1  ;;  %v1407_v36 = vrot.slane %v1406_v46, 1  ;;  %v1414_v6 = vrot.slane %v1413_v24, 1  ;;  %v4018_v20 = vsel %vm610_vm2, %v3724_v3, -inf }
  0xca   : > { %v1421_v10 = vrot.slane %v1420_v26, 1  ;;  %v1428_v9 = vrot.slane %v1427_v58, 1  ;;  %v1435_v34 = vrot.slane %v1434_v45, 1  ;;  %v4022_v13 = vsel %vm610_vm2, %v3762_v22, -inf }
  0xcb   : > { %v1442_v39 = vrot.slane %v1441_v17, 1  ;;  %v1448_v23 = vmax.f32 %v1446_v5, %v1447_v16  ;;  %v4026_v29 = vsel %vm610_vm2, %v3730_v62, -inf  ;;  %v4030_v32 = vsel %vm610_vm2, %v3764_v11, -inf }
  0xcc   : > { %v4040_v3 = vsel %vm610_vm2, %v3732_v63, -inf  ;;  %v4044_v22 = vsel %vm610_vm2, %v3772_v49, -inf  ;;  %v4048_v62 = vsel %vm610_vm2, %v3734_v57, -inf  ;;  %v4052_v11 = vsel %vm610_vm2, %v3774_v59, -inf  ;;  %v5109_v57 = vld [vmem:[#allocation50_spill] sm:$0xff]  ;;  %v5111_v63 = vld [vmem:[#allocation44_spill] sm:$0xff] }
  0xcd   : > { %v4054_v5 = vmax.f32 %v1399_v38, %v1400_v52  ;;  %v4056_v16 = vmax.f32 %v1406_v46, %v1407_v36  ;;  %v4058_v2 = vmax.f32 %v1413_v24, %v1414_v6  ;;  %v4062_v15 = vmax.f32 %v1420_v26, %v1421_v10  ;;  %v5076_v38 = vld [vmem:[#allocation11_spill] sm:$0xff]  ;;  %v5078_v24 = vld [vmem:[#allocation33_spill] sm:$0xff] }
  0xce   : > { %v4064_v49 = vmax.f32 %v1427_v58, %v1428_v9  ;;  %v4066_v21 = vmax.f32 %v1434_v45, %v1435_v34  ;;  %v4070_v59 = vmax.f32 %v1441_v17, %v1442_v39  ;;  %v1449_v41 = vrot.slane %v1448_v23, 1  ;;  %v5065_v45 = vld [vmem:[#allocation31_spill] sm:$0xff]  ;;  %v5079_v34 = vld [vmem:[#allocation10_spill] sm:$0xff]  ;;  %v5088_v39 = vld [vmem:[#allocation36_spill] sm:$0xff] }
  0xcf   : > { %v4079_v55 = vsel %vm610_vm2, %v3736_v4, -inf  ;;  %v4083_v44 = vsel %vm610_vm2, %v5065_v45, -inf  ;;  %v4087_v17 = vsel %vm610_vm2, %v5066_v60, -inf  ;;  %v4091_v54 = vsel %vm610_vm2, %v5068_v19, -inf  ;;  %v5081_v60 = vld [vmem:[#allocation34_spill] sm:$0xff]  ;;  %v5097_v45 = vld [vmem:[#allocation47_spill] sm:$0xff] }
  0xd0   : > { %5067 = vst [vmem:[#allocation31_spill] sm:$0xff] %v4087_v17  ;;  %5069 = vst [vmem:[#allocation28_spill] sm:$0xff] %v4091_v54  ;;  %v4095_v12 = vsel %vm610_vm2, %v5070_v37, -inf  ;;  %v4099_v4 = vsel %vm610_vm2, %v5072_v28, -inf  ;;  %v4103_v30 = vsel %vm610_vm2, %v5074_v25, -inf  ;;  %v4107_v46 = vsel %vm610_vm2, %v5076_v38, -inf }
  0xd1   : > { %5071 = vst [vmem:[#allocation9_spill] sm:$0xff] %v4095_v12  ;;  %5073 = vst [vmem:[#allocation29_spill] sm:$0xff] %v4099_v4  ;;  %v4111_v26 = vsel %vm610_vm2, %v5078_v24, -inf  ;;  %v4115_v58 = vsel %vm610_vm2, %v3842_v50, -inf  ;;  %v4119_v52 = vsel %vm610_vm2, %v3810_v0, -inf  ;;  %v4123_v36 = vsel %vm610_vm2, %v3844_v56, -inf }
  0xd2   : > { %5075 = vst [vmem:[#allocation32_spill] sm:$0xff] %v4103_v30  ;;  %5077 = vst [vmem:[#allocation30_spill] sm:$0xff] %v4107_v46  ;;  %v4128_v6 = vsel %vm610_vm2, %v3812_v14, -inf  ;;  %v4132_v10 = vsel %vm610_vm2, %v3852_v43, -inf  ;;  %v4136_v50 = vsel %vm610_vm2, %v3814_v35, -inf  ;;  %v4140_v0 = vsel %vm610_vm2, %v3854_v48, -inf }
  0xd3   : > { %v4142_v9 = vmax.f32 %v1448_v23, %v1449_v41  ;;  %v4148_v14 = vsel %vm610_vm2, %v5079_v34, -inf  ;;  %v4152_v43 = vsel %vm610_vm2, %v3858_v8, -inf  ;;  %v4170_v19 = vsel %vm610_vm2, %v5081_v60, -inf  ;;  %v5084_v25 = vld [vmem:[#allocation35_spill] sm:$0xff]  ;;  %v5086_v24 = vld [vmem:[#allocation37_spill] sm:$0xff]  ;;  %v5090_v60 = vld [vmem:[#allocation38_spill] sm:$0xff] }
  0xd4   : > { %5080 = vst [vmem:[#allocation11_spill] sm:$0xff] %v4152_v43  ;;  %5082 = vst [vmem:[#allocation33_spill] sm:$0xff] %v4170_v19  ;;  %v4176_v28 = vsel %vm610_vm2, %v3864_v33, -inf  ;;  %v4180_v38 = vsel %vm610_vm2, %v5084_v25, -inf  ;;  %v4184_v34 = vsel %vm610_vm2, %v5086_v24, -inf  ;;  %v4188_v48 = vsel %vm610_vm2, %v5088_v39, -inf }
  0xd5   : > { %5083 = vst [vmem:[#allocation10_spill] sm:$0xff] %v4176_v28  ;;  %5085 = vst [vmem:[#allocation34_spill] sm:$0xff] %v4180_v38  ;;  %v4192_v35 = vsel %vm610_vm2, %v5090_v60, -inf  ;;  %v5092_v37 = vld [vmem:[#allocation39_spill] sm:$0xff]  ;;  %v4200_v25 = vsel %vm610_vm2, %v3929_v61, -inf  ;;  %v5095_v24 = vld [vmem:[#allocation40_spill] sm:$0xff] }
  0xd6   : > { %5087 = vst [vmem:[#allocation35_spill] sm:$0xff] %v4184_v34  ;;  %5089 = vst [vmem:[#allocation37_spill] sm:$0xff] %v4188_v48  ;;  %v4196_v33 = vsel %vm610_vm2, %v5092_v37, -inf  ;;  %v4209_v39 = vsel %vm610_vm2, %v5095_v24, -inf  ;;  %v4213_v60 = vsel %vm610_vm2, %v5097_v45, -inf  ;;  %v5099_v37 = vld [vmem:[#allocation41_spill] sm:$0xff] }
  0xd7   : > { %5091 = vst [vmem:[#allocation36_spill] sm:$0xff] %v4192_v35  ;;  %5093 = vst [vmem:[#allocation38_spill] sm:$0xff] %v4196_v33  ;;  %v4217_v8 = vsel %vm610_vm2, %v5099_v37, -inf  ;;  %v5101_v61 = vld [vmem:[#allocation48_spill] sm:$0xff]  ;;  %v5103_v41 = vld [vmem:[#allocation42_spill] sm:$0xff]  ;;  %v4229_v24 = vsel %vm610_vm2, %v5105_v1, -inf }
  0xd8   : > { %5094 = vst [vmem:[#allocation39_spill] sm:$0xff] %v4200_v25  ;;  %5096 = vst [vmem:[#allocation40_spill] sm:$0xff] %v4209_v39  ;;  %v4221_v56 = vsel %vm610_vm2, %v5101_v61, -inf  ;;  %v4225_v23 = vsel %vm610_vm2, %v5103_v41, -inf  ;;  %v4233_v45 = vsel %vm610_vm2, %v5107_v53, -inf  ;;  %v4237_v37 = vsel %vm610_vm2, %v5109_v57, -inf }
  0xd9   : > { %5098 = vst [vmem:[#allocation47_spill] sm:$0xff] %v4213_v60  ;;  %5100 = vst [vmem:[#allocation41_spill] sm:$0xff] %v4217_v8  ;;  %v4241_v61 = vsel %vm610_vm2, %v5111_v63, -inf  ;;  %v5113_v46 = vld [vmem:[#allocation51_spill] sm:$0xff]  ;;  %v5115_v30 = vld [vmem:[#allocation45_spill] sm:$0xff]  ;;  %v4287_v17 = vsel %vm610_vm2, %v3994_v51, -inf }
  0xda   : > { %5102 = vst [vmem:[#allocation48_spill] sm:$0xff] %v4221_v56  ;;  %5104 = vst [vmem:[#allocation42_spill] sm:$0xff] %v4225_v23  ;;  %v4245_v41 = vsel %vm610_vm2, %v5113_v46, -inf  ;;  %v4249_v1 = vsel %vm610_vm2, %v5115_v30, -inf  ;;  %v5117_v4 = vld [vmem:[#allocation52_spill] sm:$0xff]  ;;  %v5119_v35 = vld [vmem:[#allocation46_spill] sm:$0xff] }
  0xdb   : > { %5106 = vst [vmem:[#allocation49_spill] sm:$0xff] %v4229_v24  ;;  %5108 = vst [vmem:[#allocation43_spill] sm:$0xff] %v4233_v45  ;;  %v4253_v53 = vsel %vm610_vm2, %v5117_v4, -inf  ;;  %v1547_v54 = vld [vmem:[%s4205_s14] sm:$0xff]  ;;  %v1548_v12 = vld [vmem:[%s4205_s14 + $0x8] sm:$0xff]  ;;  %v4279_v48 = vsel %vm610_vm2, %v5119_v35, -inf }
  0xdc   : > { %5110 = vst [vmem:[#allocation50_spill] sm:$0xff] %v4237_v37  ;;  %5112 = vst [vmem:[#allocation44_spill] sm:$0xff] %v4241_v61  ;;  %v5121_v30 = vld [vmem:[#allocation53_spill] sm:$0xff]  ;;  %v4291_v57 = vsel %vm610_vm2, %v4054_v5, -inf  ;;  %v4295_v63 = vsel %vm610_vm2, %v3996_v27, -inf  ;;  %v1555_v46 = vcombine.high %v1547_v54, %v1547_v54  ;;  %v4299_v35 = vsel %vm610_vm2, %v4056_v16, -inf }
  0xdd   : > { %5114 = vst [vmem:[#allocation51_spill] sm:$0xff] %v4245_v41  ;;  %5116 = vst [vmem:[#allocation45_spill] sm:$0xff] %v4249_v1  ;;  %v4283_v4 = vsel %vm610_vm2, %v5121_v30, -inf  ;;  %v5127_v30 = vld [vmem:[#allocation8_spill] sm:$0xff]  ;;  %v1572_v1 = vcombine.high %v1548_v12, %v1548_v12  ;;  %v4307_v5 = vsel %vm610_vm2, %v3998_v42, -inf  ;;  %v4311_v27 = vsel %vm610_vm2, %v4058_v2, -inf }
  0xde   : > { %5118 = vst [vmem:[#allocation52_spill] sm:$0xff] %v4253_v53  ;;  %5120 = vst [vmem:[#allocation46_spill] sm:$0xff] %v4279_v48  ;;  %v1562_v53 = vrot.slane %v1547_v54, %v5127_v30  ;;  %v1579_v51 = vrot.slane %v1548_v12, %v5127_v30  ;;  %v1569_v16 = vrot.slane %v1555_v46, %v5127_v30  ;;  %v4316_v54 = vsel %vm610_vm2, %v4000_v40, -inf  ;;  %v1549_v48 = vld [vmem:[%s4205_s14 + $0x10] sm:$0xff] }
  0xdf   : > { %5122 = vst [vmem:[#allocation53_spill] sm:$0xff] %v4283_v4  ;;  %5123 = vst [vmem:[#allocation54_spill] sm:$0xff] %v4287_v17  ;;  %v4320_v12 = vsel %vm610_vm2, %v4062_v15, -inf  ;;  %v1586_v4 = vrot.slane %v1572_v1, %v5127_v30  ;;  %v4332_v41 = vsel %vm610_vm2, %v4008_v47, -inf  ;;  %v4345_v40 = vsel %vm610_vm2, %v4010_v31, -inf }
  0xe0   : > { %5124 = vst [vmem:[#allocation55_spill] sm:$0xff] %v4291_v57  ;;  %5125 = vst [vmem:[#allocation56_spill] sm:$0xff] %v4295_v63  ;;  %v1570_v34 = vcombine.high %v1562_v53, %v1562_v53  ;;  %v1571_v38 = vcombine.high %v1569_v16, %v1569_v16  ;;  %v1587_v46 = vcombine.high %v1579_v51, %v1579_v51  ;;  %v1639_v15 = vsel %vm497_vm1, %v1562_v53, -inf  ;;  %v1550_v57 = vld [vmem:[%s4205_s14 + $0x18] sm:$0xff]  ;;  %s2929_s14 = sshll.u32 %s2690_s12, 6  ;;  %s3136_s12 = scalar_lea.vmem %s3135_s27, 512 }
  0xe1   : > { %5126 = vst [vmem:[#allocation57_spill] sm:$0xff] %v4299_v35  ;;  %5128 = vst [vmem:[#allocation8_spill] sm:$0xff] %v4307_v5  ;;  %v1588_v17 = vcombine.high %v1586_v4, %v1586_v4  ;;  %v1640_v2 = vrot.slane %v1639_v15, 4  ;;  %v4341_v63 = vsel %vm610_vm2, %v4064_v49, -inf  ;;  %v1589_v47 = vcombine.high %v1549_v48, %v1549_v48  ;;  %s4809_s26 = scalar_lea.hbm %s4904_s4, %s2929_s14 }
  0xe2   : > { %5129 = vst [vmem:[#allocation58_spill] sm:$0xff] %v4311_v27  ;;  %5130 = vst [vmem:[#allocation59_spill] sm:$0xff] %v4316_v54  ;;  %v1646_v1 = vsel %vm497_vm1, %v1570_v34, -inf  ;;  %v1653_v53 = vsel %vm497_vm1, %v1569_v16, -inf  ;;  %v1660_v34 = vsel %vm497_vm1, %v1571_v38, -inf  ;;  %v1667_v42 = vsel %vm497_vm1, %v1579_v51, -inf }
  0xe3   : > { %5131 = vst [vmem:[#allocation60_spill] sm:$0xff] %v4320_v12  ;;  %5132 = vst [vmem:[#allocation61_spill] sm:$0xff] %v4332_v41  ;;  %v1647_v35 = vrot.slane %v1646_v1, 4  ;;  %v1654_v27 = vrot.slane %v1653_v53, 4  ;;  %v1674_v12 = vsel %vm497_vm1, %v1587_v46, -inf  ;;  %v4353_v54 = vsel %vm610_vm2, %v4066_v21, -inf }
  0xe4   : > { %5133 = vst [vmem:[#allocation62_spill] sm:$0xff] %v4341_v63  ;;  %5134 = vst [vmem:[#allocation63_spill] sm:$0xff] %v4345_v40  ;;  %v4357_v49 = vsel %vm610_vm2, %v4012_v7, -inf  ;;  %v1596_v31 = vrot.slane %v1549_v48, %v5127_v30  ;;  %v1606_v5 = vcombine.high %v1550_v57, %v1550_v57  ;;  %v1641_v61 = vmax.f32 %v1639_v15, %v1640_v2 }
  0xe5   : > { %5135 = vst [vmem:[#allocation64_spill] sm:$0xff] %v4353_v54  ;;  %5136 = vst [vmem:[#allocation65_spill] sm:$0xff] %v4357_v49  ;;  %v1648_v16 = vmax.f32 %v1646_v1, %v1647_v35  ;;  %v1681_v37 = vsel %vm497_vm1, %v1586_v4, -inf  ;;  %v1688_v38 = vsel %vm497_vm1, %v1588_v17, -inf  ;;  %v1655_v51 = vmax.f32 %v1653_v53, %v1654_v27 }
  0xe6   : > { %v1661_v45 = vrot.slane %v1660_v34, 4  ;;  %v1668_v46 = vrot.slane %v1667_v42, 4  ;;  %v1675_v24 = vrot.slane %v1674_v12, 4  ;;  %v4364_v21 = vsel %vm610_vm2, %v4070_v59, -inf }
  0xe7   : > { %5137 = vst [vmem:[#allocation66_spill] sm:$0xff] %v4364_v21  ;;  %v4368_v7 = vsel %vm610_vm2, %v4014_v18, -inf  ;;  %v4372_v48 = vsel %vm610_vm2, %v4142_v9, -inf  ;;  %v1603_v4 = vrot.slane %v1589_v47, %v5127_v30  ;;  %v1613_v17 = vrot.slane %v1550_v57, %v5127_v30 }
  0xe8   : > { %5138 = vst [vmem:[#allocation67_spill] sm:$0xff] %v4368_v7  ;;  %5139 = vst [vmem:[#allocation68_spill] sm:$0xff] %v4372_v48  ;;  %v1620_v35 = vrot.slane %v1606_v5, %v5127_v30  ;;  %v1682_v27 = vrot.slane %v1681_v37, 4  ;;  %v1689_v2 = vrot.slane %v1688_v38, 4  ;;  %v1604_v15 = vcombine.high %v1596_v31, %v1596_v31 }
  0xe9   : > { %v1642_v1 = vrot.slane %v1641_v61, 2  ;;  %v1649_v53 = vrot.slane %v1648_v16, 2  ;;  %v1656_v18 = vrot.slane %v1655_v51, 2  ;;  %v1662_v23 = vmax.f32 %v1660_v34, %v1661_v45 }
  0xea   : > { %v1669_v28 = vmax.f32 %v1667_v42, %v1668_v46  ;;  %v1676_v19 = vmax.f32 %v1674_v12, %v1675_v24  ;;  %v1605_v5 = vcombine.high %v1603_v4, %v1603_v4  ;;  %v1621_v47 = vcombine.high %v1613_v17, %v1613_v17 }
  0xeb   : > { %v1622_v56 = vcombine.high %v1620_v35, %v1620_v35  ;;  %v1683_v59 = vmax.f32 %v1681_v37, %v1682_v27  ;;  %v1690_v63 = vmax.f32 %v1688_v38, %v1689_v2  ;;  %v1643_v41 = vmax.f32 %v1641_v61, %v1642_v1 }
  0xec   : > { %v4385_v8 = vmax.f32 %v1648_v16, %v1649_v53  ;;  %v1695_v45 = vsel %vm497_vm1, %v1596_v31, -inf  ;;  %v1702_v24 = vsel %vm497_vm1, %v1604_v15, -inf  ;;  %v4389_v12 = vmax.f32 %v1655_v51, %v1656_v18 }
  0xed   : > { %v1663_v42 = vrot.slane %v1662_v23, 2  ;;  %v1670_v34 = vrot.slane %v1669_v28, 2  ;;  %v1677_v46 = vrot.slane %v1676_v19, 2  ;;  %v1696_v57 = vrot.slane %v1695_v45, 4 }
  0xee   : > { %v1703_v9 = vrot.slane %v1702_v24, 4  ;;  %v1709_v30 = vsel %vm497_vm1, %v1603_v4, -inf  ;;  %v1716_v48 = vsel %vm497_vm1, %v1605_v5, -inf  ;;  %v1684_v37 = vrot.slane %v1683_v59, 2 }
  0xef   : > { %v1691_v38 = vrot.slane %v1690_v63, 2  ;;  %v1710_v61 = vrot.slane %v1709_v30, 4  ;;  %v1717_v16 = vrot.slane %v1716_v48, 4  ;;  %v1697_v27 = vmax.f32 %v1695_v45, %v1696_v57 }
  0xf0   : > { %v1704_v2 = vmax.f32 %v1702_v24, %v1703_v9  ;;  %v1723_v31 = vsel %vm497_vm1, %v1613_v17, -inf  ;;  %v1730_v51 = vsel %vm497_vm1, %v1621_v47, -inf  ;;  %v1737_v4 = vsel %vm497_vm1, %v1620_v35, -inf }
  0xf1   : > { %v1711_v15 = vmax.f32 %v1709_v30, %v1710_v61  ;;  %v1718_v1 = vmax.f32 %v1716_v48, %v1717_v16  ;;  %v1724_v53 = vrot.slane %v1723_v31, 4  ;;  %v1731_v18 = vrot.slane %v1730_v51, 4 }
  0xf2   : > { %v1698_v7 = vrot.slane %v1697_v27, 2  ;;  %v1705_v21 = vrot.slane %v1704_v2, 2  ;;  %v1744_v5 = vsel %vm497_vm1, %v1622_v56, -inf  ;;  %v1664_v57 = vmax.f32 %v1662_v23, %v1663_v42 }
  0xf3   : > { %v1712_v49 = vrot.slane %v1711_v15, 2  ;;  %v1719_v54 = vrot.slane %v1718_v1, 2  ;;  %v1725_v40 = vmax.f32 %v1723_v31, %v1724_v53  ;;  %v1732_v60 = vmax.f32 %v1730_v51, %v1731_v18 }
  0xf4   : > { %v1699_v9 = vmax.f32 %v1697_v27, %v1698_v7  ;;  %v1738_v45 = vrot.slane %v1737_v4, 4  ;;  %v1745_v17 = vrot.slane %v1744_v5, 4  ;;  %v1671_v24 = vmax.f32 %v1669_v28, %v1670_v34 }
  0xf5   : > { %v1706_v47 = vmax.f32 %v1704_v2, %v1705_v21  ;;  %v1726_v30 = vrot.slane %v1725_v40, 2  ;;  %v1733_v48 = vrot.slane %v1732_v60, 2  ;;  %v1678_v61 = vmax.f32 %v1676_v19, %v1677_v46 }
  0xf6   : > { %v1713_v16 = vmax.f32 %v1711_v15, %v1712_v49  ;;  %v1739_v39 = vmax.f32 %v1737_v4, %v1738_v45  ;;  %v1746_v25 = vmax.f32 %v1744_v5, %v1745_v17  ;;  %v1644_v35 = vrot.slane %v1643_v41, 1 }
  0xf7   : > { %v1685_v33 = vmax.f32 %v1683_v59, %v1684_v37  ;;  %v1692_v56 = vmax.f32 %v1690_v63, %v1691_v38  ;;  %v1720_v43 = vmax.f32 %v1718_v1, %v1719_v54  ;;  %v1651_v31 = vrot.slane %v4385_v8, 1 }
  0xf8   : > { %v1700_v51 = vrot.slane %v1699_v9, 1  ;;  %v1727_v23 = vmax.f32 %v1725_v40, %v1726_v30  ;;  %v1734_v7 = vmax.f32 %v1732_v60, %v1733_v48  ;;  %v1658_v42 = vrot.slane %v4389_v12, 1 }
  0xf9   : > { %v1707_v28 = vrot.slane %v1706_v47, 1  ;;  %v1740_v21 = vrot.slane %v1739_v39, 2  ;;  %v1747_v34 = vrot.slane %v1746_v25, 2  ;;  %v1665_v19 = vrot.slane %v1664_v57, 1 }
  0xfa   : > { %v1672_v49 = vrot.slane %v1671_v24, 1  ;;  %v1679_v46 = vrot.slane %v1678_v61, 1  ;;  %v1714_v27 = vrot.slane %v1713_v16, 1  ;;  %v1645_v2 = vmax.f32 %v1643_v41, %v1644_v35 }
  0xfb   : > { %v1686_v59 = vrot.slane %v1685_v33, 1  ;;  %v1693_v63 = vrot.slane %v1692_v56, 1  ;;  %v1721_v54 = vrot.slane %v1720_v43, 1  ;;  %v1652_v37 = vmax.f32 %v4385_v8, %v1651_v31 }
  0xfc   : > { %v1701_v40 = vmax.f32 %v1699_v9, %v1700_v51  ;;  %v1728_v60 = vrot.slane %v1727_v23, 1  ;;  %v1735_v38 = vrot.slane %v1734_v7, 1  ;;  %v1659_v15 = vmax.f32 %v4389_v12, %v1658_v42  ;;  %v5141_v42 = vld [vmem:[#allocation13_spill] sm:$0xff] }
  0xfd   : > { %v1708_v1 = vmax.f32 %v1706_v47, %v1707_v28  ;;  %v1741_v53 = vmax.f32 %v1739_v39, %v1740_v21  ;;  %v1748_v18 = vmax.f32 %v1746_v25, %v1747_v34  ;;  %v1666_v4 = vmax.f32 %v1664_v57, %v1665_v19  ;;  %v5143_v34 = vld [vmem:[#allocation14_spill] sm:$0xff]  ;;  %v5144_v19 = vld [vmem:[#allocation15_spill] sm:$0xff] }
  0xfe   : > { %v1673_v5 = vmax.f32 %v1671_v24, %v1672_v49  ;;  %v1680_v45 = vmax.f32 %v1678_v61, %v1679_v46  ;;  %v1715_v41 = vmax.f32 %v1713_v16, %v1714_v27  ;;  %v1687_v17 = vmax.f32 %v1685_v33, %v1686_v59  ;;  %v5146_v27 = vld [vmem:[#allocation16_spill] sm:$0xff] }
  0xff   : > { %v4405_v30 = vmax.f32 %v1692_v56, %v1693_v63  ;;  %v1722_v8 = vmax.f32 %v1720_v43, %v1721_v54  ;;  %v4408_v9 = vsel %vm610_vm2, %v1645_v2, -inf  ;;  %v1729_v48 = vmax.f32 %v1727_v23, %v1728_v60  ;;  %v5147_v2 = vld [vmem:[#allocation17_spill] sm:$0xff] }
 0x100   : > { %v1736_v12 = vmax.f32 %v1734_v7, %v1735_v38  ;;  %v4411_v39 = vsel %vm610_vm2, %v1701_v40, -inf  ;;  %v4414_v25 = vsel %vm610_vm2, %v1652_v37, -inf  ;;  %v1742_v57 = vrot.slane %v1741_v53, 1  ;;  %v5140_v7 = vld [vmem:[#allocation12_spill] sm:$0xff] }
 0x101   : > { %v1749_v24 = vrot.slane %v1748_v18, 1  ;;  %v4417_v47 = vsel %vm610_vm2, %v1708_v1, -inf  ;;  %v1777_v33 = vstv %s1776_s15  ;;  %v4420_v61 = vsel %vm610_vm2, %v1659_v15, -inf  ;;  %s2693_s15 = sshll.u32 %s346_s13, 4  ;;  %s4811_s15 = int_to_ptr.vmem [resolvable:$true] %s2693_s15 }
 0x102   : > { %v4423_v43 = vsel %vm610_vm2, %v1715_v41, -inf  ;;  %vm1778_vm3 = vcmp.eq.s32.totalorder %v1777_v33, 1  ;;  %v4428_v16 = vsel %vm610_vm2, %v1666_v4, -inf  ;;  %v4431_v35 = vsel %vm610_vm2, %v1722_v8, -inf  ;;  %v5149_v4 = vld [vmem:[#allocation18_spill] sm:$0xff]  ;;  %v5152_v33 = vld [vmem:[#allocation20_spill] sm:$0xff]  ;;  %p3137_p11 = scmp.lt.s32.totalorder %s4811_s15, %s3135_s27 }
 0x103   : > { %v4434_v56 = vsel %vm610_vm2, %v1673_v5, -inf  ;;  %v3255_v31 = vmov 0.0   ;;  %v4439_v23 = vsel %vm610_vm2, %v1729_v48, -inf  ;;  %v5142_v28 = vmax.f32 %v5140_v7, %v5141_v42  ;;  %v5150_v5 = vld [vmem:[#allocation19_spill] sm:$0xff]  ;;  %v5153_v7 = vld [vmem:[#allocation21_spill] sm:$0xff]  ;;  %s3130_s8 = scalar_lea.vmem %s4811_s15, 256 }
 0x104   : > { %v4436_v51 = vsel %vm1778_vm3, 1.0, %v3255_v31  ;;  %v5145_v49 = vmax.f32 %v5143_v34, %v5144_v19  ;;  %v5148_v59 = vmax.f32 %v5146_v27, %v5147_v2  ;;  %v1743_v54 = vmax.f32 %v1741_v53, %v1742_v57  ;;  %v5155_v34 = vld [vmem:[#allocation22_spill] sm:$0xff]  ;;  %v5156_v19 = vld [vmem:[#allocation23_spill] sm:$0xff]  ;;  %p3131_p7 = scmp.ne.s32.totalorder %s4811_s15, %s3130_s8  ;;  %p3138_p12 = scmp.lt.s32.totalorder %s3136_s12, %s3130_s8 }
 0x105   : > { %v1788_v21 = vmul.f32 %v4436_v51, %v5142_v28  ;;  %v4453_v37 = vmax.f32 %v1748_v18, %v1749_v24  ;;  %v1753_v40 = vmax.f32 %v4408_v9, %v4411_v39  ;;  %v1756_v60 = vmax.f32 %v4414_v25, %v4417_v47 }
 0x106   : > { %v1789_v46 = vmul.f32 %v4436_v51, %v5145_v49  ;;  %v1790_v63 = vmul.f32 %v4436_v51, %v5148_v59  ;;  %v4460_v38 = vsel %vm610_vm2, %v1680_v45, -inf  ;;  %v4463_v15 = vsel %vm610_vm2, %v1736_v12, -inf  ;;  %p3132_p9 = pnand %p3131_p7, %p3341_p3  ;;  %p3139_p13 = por %p3138_p12, %p3137_p11 }
 0x107   : > { %v1781_v1 = vstv %s1780_s16  ;;  %v5151_v41 = vmax.f32 %v5149_v4, %v5150_v5  ;;  %v1759_v18 = vmax.f32 %v4420_v61, %v4423_v43  ;;  %v1762_v8 = vmax.f32 %v4428_v16, %v4431_v35 }
 0x108   : > { %v1765_v48 = vmax.f32 %v4434_v56, %v4439_v23  ;;  %v1884_v45 = vrot.slane %v1788_v21, 7  ;;  %v1885_v57 = vrot.slane %v1789_v46, 6  ;;  %v1888_v12 = vrot.slane %v1790_v63, 5  ;;  %p3133_p10 = pneg %p3132_p9 }
 0x109   : > { %v1791_v53 = vmul.f32 %v4436_v51, %v5151_v41  ;;  %v1768_v24 = vmax.f32 %v4460_v38, %v4463_v15  ;;  %vm1782_vm6 = vcmp.eq.s32.totalorder %v1781_v1, 1  ;;  %v5154_v42 = vmax.f32 %v5152_v33, %v5153_v7  ;;  %v5161_v7 = vld [vmem:[#allocation25_spill] sm:$0xff] }
 0x10a   : > { %v5157_v49 = vmax.f32 %v5155_v34, %v5156_v19  ;;  %v4486_v2 = vsel %vm610_vm2, %v1687_v17, -inf  ;;  %v4489_v21 = vsel %vm610_vm2, %v1743_v54, -inf  ;;  %v1887_v46 = vsel %vm1886_vm4, %v1885_v57, %v1884_v45  ;;  %v5160_v17 = vld [vmem:[#allocation24_spill] sm:$0xff]  ;;  %p3140_p0 = pnand %p3139_p13, %p3133_p10 }
 0x10b   : > { %v1792_v28 = vmul.f32 %v4436_v51, %v5154_v42  ;;  %v1891_v59 = vrot.slane %v1791_v53, 4  ;;  %v1890_v63 = vsel %vm1889_vm5, %v1888_v12, %v1887_v46  ;;  %v5158_v1 = vmax.f32 %v4018_v20, %v4022_v13 }
 0x10c   : > { %v1793_v27 = vmul.f32 %v4436_v51, %v5157_v49  ;;  %v5159_v5 = vmax.f32 %v4026_v29, %v4030_v32  ;;  %v4499_v33 = vsel %vm1782_vm6, 1.0, %v3255_v31  ;;  %v5162_v54 = vmax.f32 %v5160_v17, %v5161_v7  ;;  %v5178_v7 = vld [vmem:[#allocation40_spill] sm:$0xff] }
 0x10d   : > { %v1903_v4 = vrot.slane %v5158_v1, 7  ;;  %v5163_v53 = vmax.f32 %v4040_v3, %v4044_v22  ;;  %v5164_v57 = vmax.f32 %v4048_v62, %v4052_v11  ;;  %v1894_v13 = vrot.slane %v1792_v28, 3 }
 0x10e   : > { %v1904_v41 = vrot.slane %v5159_v5, 6  ;;  %v1794_v42 = vmul.f32 %v4436_v51, %v5162_v54  ;;  %v1897_v12 = vrot.slane %v1793_v27, 2  ;;  %v1893_v32 = vsel %vm1892_vm7, %v1891_v59, %v1890_v63  ;;  %v5179_v54 = vld [vmem:[#allocation47_spill] sm:$0xff] }
 0x10f   : > { %v1906_v45 = vrot.slane %v5163_v53, 5  ;;  %v1908_v20 = vrot.slane %v5164_v57, 4  ;;  %v5165_v34 = vmax.f32 %v4111_v26, %v4115_v58  ;;  %v5166_v3 = vmax.f32 %v4119_v52, %v4123_v36  ;;  %v5170_v52 = vld [vmem:[#allocation11_spill] sm:$0xff]  ;;  %v5181_v53 = vld [vmem:[#allocation41_spill] sm:$0xff] }
 0x110   : > { %v1905_v29 = vsel %vm1886_vm4, %v1904_v41, %v1903_v4  ;;  %v5167_v62 = vmax.f32 %v4079_v55, %v4083_v44  ;;  %v5168_v28 = vmax.f32 %v4128_v6, %v4132_v10  ;;  %v5169_v27 = vmax.f32 %v4136_v50, %v4140_v0  ;;  %v5172_v6 = vld [vmem:[#allocation38_spill] sm:$0xff]  ;;  %v5173_v10 = vld [vmem:[#allocation39_spill] sm:$0xff]  ;;  %v5176_v0 = vld [vmem:[#allocation28_spill] sm:$0xff] }
 0x111   : > { %v1907_v31 = vsel %vm1889_vm5, %v1906_v45, %v1905_v29  ;;  %v1916_v19 = vrot.slane %v5165_v34, 7  ;;  %v1917_v22 = vrot.slane %v5166_v3, 6  ;;  %v1900_v59 = vrot.slane %v1794_v42, 1  ;;  %v5175_v50 = vld [vmem:[#allocation31_spill] sm:$0xff]  ;;  %v5182_v45 = vld [vmem:[#allocation48_spill] sm:$0xff]  ;;  %v5184_v29 = vld [vmem:[#allocation33_spill] sm:$0xff] }
 0x112   : > { %v1910_v11 = vrot.slane %v5167_v62, 3  ;;  %v1919_v49 = vrot.slane %v5168_v28, 5  ;;  %v1921_v46 = vrot.slane %v5169_v27, 4  ;;  %v1909_v26 = vsel %vm1892_vm7, %v1908_v20, %v1907_v31  ;;  %v5188_v3 = vld [vmem:[#allocation49_spill] sm:$0xff]  ;;  %v5190_v28 = vld [vmem:[#allocation43_spill] sm:$0xff] }
 0x113   : > { %v1918_v58 = vsel %vm1886_vm4, %v1917_v22, %v1916_v19  ;;  %v5171_v36 = vmax.f32 %v4148_v14, %v5170_v52  ;;  %v1896_v55 = vsel %vm1895_vm8, %v1894_v13, %v1893_v32  ;;  %v5174_v1 = vmax.f32 %v5172_v6, %v5173_v10  ;;  %v5185_v32 = vld [vmem:[#allocation10_spill] sm:$0xff]  ;;  %v5197_v10 = vld [vmem:[#allocation55_spill] sm:$0xff] }
 0x114   : > { %v1920_v44 = vsel %vm1889_vm5, %v1919_v49, %v1918_v58  ;;  %v5177_v5 = vmax.f32 %v5175_v50, %v5176_v0  ;;  %v5180_v42 = vmax.f32 %v5178_v7, %v5179_v54  ;;  %v5183_v57 = vmax.f32 %v5181_v53, %v5182_v45  ;;  %v5187_v19 = vld [vmem:[#allocation42_spill] sm:$0xff]  ;;  %v5200_v7 = vld [vmem:[#allocation29_spill] sm:$0xff]  ;;  %v5202_v45 = vld [vmem:[#allocation56_spill] sm:$0xff] }
 0x115   : > { %v1923_v63 = vrot.slane %v5171_v36, 3  ;;  %v1929_v4 = vrot.slane %v5174_v1, 7  ;;  %v1922_v17 = vsel %vm1892_vm7, %v1921_v46, %v1920_v44  ;;  %v1911_v13 = vsel %vm1895_vm8, %v1910_v11, %v1909_v26  ;;  %v5191_v49 = vld [vmem:[#allocation50_spill] sm:$0xff]  ;;  %v5193_v36 = vld [vmem:[#allocation44_spill] sm:$0xff]  ;;  %v5194_v44 = vld [vmem:[#allocation51_spill] sm:$0xff] }
 0x116   : > { %v1912_v41 = vrot.slane %v5177_v5, 2  ;;  %v1930_v14 = vrot.slane %v5180_v42, 6  ;;  %v1932_v20 = vrot.slane %v5183_v57, 5  ;;  %v5186_v31 = vmax.f32 %v5184_v29, %v5185_v32  ;;  %v5196_v26 = vld [vmem:[#allocation54_spill] sm:$0xff]  ;;  %v5199_v5 = vld [vmem:[#allocation9_spill] sm:$0xff]  ;;  %v5206_v29 = vld [vmem:[#allocation35_spill] sm:$0xff] }
 0x117   : > { %v5189_v22 = vmax.f32 %v5187_v19, %v5188_v3  ;;  %v5192_v27 = vmax.f32 %v5190_v28, %v5191_v49  ;;  %v1924_v58 = vsel %vm1895_vm8, %v1923_v63, %v1922_v17  ;;  %v5195_v6 = vmax.f32 %v5193_v36, %v5194_v44  ;;  %v5203_v63 = vld [vmem:[#allocation57_spill] sm:$0xff]  ;;  %v5205_v57 = vld [vmem:[#allocation34_spill] sm:$0xff]  ;;  %v5208_v3 = vld [vmem:[#allocation8_spill] sm:$0xff] }
 0x118   : > { %v1925_v34 = vrot.slane %v5186_v31, 2  ;;  %v1931_v52 = vsel %vm1886_vm4, %v1930_v14, %v1929_v4  ;;  %v5198_v1 = vmax.f32 %v5196_v26, %v5197_v10  ;;  %v1899_v0 = vsel %vm1898_vm9, %v1897_v12, %v1896_v55  ;;  %v5209_v12 = vld [vmem:[#allocation58_spill] sm:$0xff]  ;;  %v5211_v49 = vld [vmem:[#allocation45_spill] sm:$0xff] }
 0x119   : > { %v1934_v62 = vrot.slane %v5189_v22, 4  ;;  %v1936_v46 = vrot.slane %v5192_v27, 3  ;;  %v1938_v11 = vrot.slane %v5195_v6, 2  ;;  %v5201_v54 = vmax.f32 %v5199_v5, %v5200_v7  ;;  %v5212_v27 = vld [vmem:[#allocation52_spill] sm:$0xff]  ;;  %v5224_v7 = vld [vmem:[#allocation30_spill] sm:$0xff] }
 0x11a   : > { %v1942_v50 = vrot.slane %v5198_v1, 7  ;;  %v1933_v53 = vsel %vm1889_vm5, %v1932_v20, %v1931_v52  ;;  %v5204_v17 = vmax.f32 %v5202_v45, %v5203_v63  ;;  %v1913_v14 = vsel %vm1898_vm9, %v1912_v41, %v1911_v13  ;;  %v5218_v6 = vld [vmem:[#allocation60_spill] sm:$0xff]  ;;  %v5220_v1 = vld [vmem:[#allocation61_spill] sm:$0xff] }
 0x11b   : > { %v1914_v42 = vrot.slane %v5201_v54, 1  ;;  %v5207_v32 = vmax.f32 %v5205_v57, %v5206_v29  ;;  %v1935_v19 = vsel %vm1892_vm7, %v1934_v62, %v1933_v53  ;;  %v5210_v55 = vmax.f32 %v5208_v3, %v5209_v12  ;;  %v5226_v53 = vld [vmem:[#allocation37_spill] sm:$0xff]  ;;  %v5227_v45 = vld [vmem:[#allocation36_spill] sm:$0xff] }
 0x11c   : > { %v1943_v4 = vrot.slane %v5204_v17, 6  ;;  %v1926_v28 = vsel %vm1898_vm9, %v1925_v34, %v1924_v58  ;;  %v1937_v20 = vsel %vm1895_vm8, %v1936_v46, %v1935_v19  ;;  %v5213_v52 = vmax.f32 %v5211_v49, %v5212_v27  ;;  %v5233_v19 = vld [vmem:[#allocation53_spill] sm:$0xff] }
 0x11d   : > { %v1927_v31 = vrot.slane %v5207_v32, 1  ;;  %v1945_v22 = vrot.slane %v5210_v55, 5  ;;  %v1771_v13 = vmax.f32 %v4486_v2, %v4489_v21  ;;  %v1828_v62 = vmul.f32 %v4499_v33, %v1753_v40  ;;  %v5214_v2 = vld [vmem:[#allocation26_spill] sm:$0xff]  ;;  %v5215_v21 = vld [vmem:[#allocation27_spill] sm:$0xff] }
 0x11e   : > { %v1940_v36 = vrot.slane %v5213_v52, 1  ;;  %v1944_v41 = vsel %vm1886_vm4, %v1943_v4, %v1942_v50  ;;  %v1829_v34 = vmul.f32 %v4499_v33, %v1756_v60  ;;  %v1939_v46 = vsel %vm1898_vm9, %v1938_v11, %v1937_v20  ;;  %v5217_v40 = vld [vmem:[#allocation59_spill] sm:$0xff]  ;;  %v5221_v50 = vld [vmem:[#allocation62_spill] sm:$0xff] }
 0x11f   : > { %v4602_v58 = vsel %vm610_vm2, %v4405_v30, -inf  ;;  %v4606_v44 = vsel %vm610_vm2, %v4453_v37, -inf  ;;  %v5216_v9 = vmax.f32 %v5214_v2, %v5215_v21  ;;  %v5219_v25 = vmax.f32 %v5217_v40, %v5218_v6  ;;  %v5229_v4 = vld [vmem:[#allocation63_spill] sm:$0xff] }
 0x120   : > { %v1902_v60 = vsel %vm1901_vm10, %v1900_v59, %v1899_v0  ;;  %v1915_v11 = vsel %vm1901_vm10, %v1914_v42, %v1913_v14  ;;  %v1928_v30 = vsel %vm1901_vm10, %v1927_v31, %v1926_v28  ;;  %v1946_v26 = vsel %vm1889_vm5, %v1945_v22, %v1944_v41  ;;  %v5230_v14 = vld [vmem:[#allocation64_spill] sm:$0xff]  ;;  %v5232_v31 = vld [vmem:[#allocation46_spill] sm:$0xff]  ;;  %v5235_v41 = vld [vmem:[#allocation65_spill] sm:$0xff] }
 0x121   : > { %v1795_v39 = vmul.f32 %v4436_v51, %v5216_v9  ;;  %v1947_v47 = vrot.slane %v5219_v25, 4  ;;  %v1830_v37 = vmul.f32 %v4499_v33, %v1759_v18  ;;  %v1831_v51 = vmul.f32 %v4499_v33, %v1762_v8 }
 0x122   : > { %v1941_v10 = vsel %vm1901_vm10, %v1940_v36, %v1939_v46  ;;  %v4632_v59 = vmul.f32 %v4499_v33, %v1765_v48  ;;  %v5222_v0 = vmax.f32 %v5220_v1, %v5221_v50  ;;  %v1955_v43 = vrot.slane %v1828_v62, 7  ;;  %v5223_v48 = vld [vmem:[#allocation32_spill] sm:$0xff]  ;;  %v5236_v62 = vld [vmem:[#allocation66_spill] sm:$0xff] }
 0x123   : > { %v1956_v18 = vrot.slane %v1829_v34, 6  ;;  %v1948_v5 = vsel %vm1892_vm7, %v1947_v47, %v1946_v26  ;;  %v1981_v16 = vsel %vm1980_vm11, 0.0, %v1902_v60  ;;  %v4640_v35 = vsel %vm1980_vm11, 0.0, %v1915_v11  ;;  %v2910_v1 = vld [vmem:[%s4903_s3 + $0x8] sm:$0x3] }
 0x124   : > { %v1949_v61 = vrot.slane %v5222_v0, 3  ;;  %v4643_v8 = vsel %vm1980_vm11, 0.0, %v1928_v30  ;;  %v4646_v56 = vsel %vm1980_vm11, 0.0, %v1941_v10  ;;  %v1987_v23 = vsel %vm1980_vm11, %v1795_v39, 0.0 }
 0x125   : > { %v5225_v54 = vmax.f32 %v5223_v48, %v5224_v7  ;;  %v5228_v63 = vmax.f32 %v5226_v53, %v5227_v45  ;;  %v5231_v57 = vmax.f32 %v5229_v4, %v5230_v14  ;;  %v1958_v32 = vrot.slane %v1830_v37, 5  ;;  %v5238_v48 = vld [vmem:[#allocation67_spill] sm:$0xff]  ;;  %v5239_v7 = vld [vmem:[#allocation68_spill] sm:$0xff] }
 0x126   : > { %v5234_v3 = vmax.f32 %v5232_v31, %v5233_v19  ;;  %v1950_v55 = vsel %vm1895_vm8, %v1949_v61, %v1948_v5  ;;  %v2005_v22 = vrot.slane %v1981_v16, 1  ;;  %v2006_v28 = vrot.slane %v1987_v23, 1 }
 0x127   : > { %v4653_v42 = vsel %vm1980_vm11, %v5225_v54, 0.0  ;;  %v1989_v17 = vsel %vm1980_vm11, %v5228_v63, 0.0  ;;  %v1951_v29 = vrot.slane %v5231_v57, 2  ;;  %v2008_v20 = vrot.slane %v4640_v35, 1 }
 0x128   : > { %v4666_v12 = vsel %vm1980_vm11, %v5234_v3, 0.0  ;;  %v2009_v49 = vrot.slane %v4653_v42, 1  ;;  %v2011_v27 = vrot.slane %v4643_v8, 1  ;;  %v2012_v52 = vrot.slane %v1989_v17, 1 }
 0x129   : > { %v2014_v36 = vrot.slane %v4646_v56, 1  ;;  %v5237_v34 = vmax.f32 %v5235_v41, %v5236_v62  ;;  %v1957_v2 = vsel %vm1886_vm4, %v1956_v18, %v1955_v43  ;;  %v2007_v21 = vsel %vm2004_vm12, %v2005_v22, %v2006_v28 }
 0x12a   : > { %v2015_v9 = vrot.slane %v4666_v12, 1  ;;  %v1833_v39 = vmul.f32 %v4499_v33, %v1768_v24  ;;  %v1952_v40 = vsel %vm1898_vm9, %v1951_v29, %v1950_v55  ;;  %v4685_v6 = vsel %vm2004_vm12, %v2008_v20, %v2009_v49  ;;  %v2916_v49 = vld [vmem:[%s4903_s3 + $0xc] sm:$0x3] }
 0x12b   : > { %v1953_v46 = vrot.slane %v5237_v34, 1  ;;  %v4688_v25 = vsel %vm2004_vm12, %v2011_v27, %v2012_v52  ;;  %v4691_v47 = vmul.f32 %v4499_v33, %v1771_v13  ;;  %v1960_v60 = vrot.slane %v1831_v51, 4 }
 0x12c   : > { %v4694_v11 = vsel %vm2004_vm12, %v2014_v36, %v2015_v9  ;;  %v2021_v30 = vpack.c.bf16 %v4685_v6, %v2007_v21  ;;  %v1959_v38 = vsel %vm1889_vm5, %v1958_v32, %v1957_v2  ;;  %v2143_v24 = vrot.slane %v1981_v16, 2 }
 0x12d   : > { %v4700_v15 = vpack.c.bf16 %v4694_v11, %v4688_v25  ;;  %v2144_v26 = vrot.slane %v1987_v23, 2  ;;  %v1954_v37 = vsel %vm1901_vm10, %v1953_v46, %v1952_v40  ;;  %v1962_v10 = vrot.slane %v4632_v59, 3  ;;  %v3128_v59 = vld [vmem:[%s4903_s3 + $0x4] sm:$0x3]  ;;  %v2919_v46 = vld [vmem:[%s4903_s3 + $0xe] sm:$0x3] }
 0x12e   : > { %2963 = vmatprep.mubr.msk.bf16.mxu0 %vm610_vm2, %v2021_v30  ;;  %v2149_v13 = vrot.slane %v4643_v8, 2  ;;  %v2150_v51 = vrot.slane %v1989_v17, 2  ;;  %v2147_v50 = vrot.slane %v4653_v42, 2  ;;  %v1993_v0 = vpack.c.bf16 %v4640_v35, %v1981_v16  ;;  %v3129_v16 = vld [vmem:[%s4903_s3 + $0x6] sm:$0x3] }
 0x12f   : > { %2964 = vmatmul.mubr.msk.bf16.vlgmr.msra.gmra.mxu0 %vm610_vm2, %v4700_v15  ;;  %v4715_v61 = vpack.c.bf16 %v4646_v56, %v4643_v8  ;;  %v2170_v43 = vsel %vm2031_vm0, %v3128_v59, 0  ;;  %v1961_v18 = vsel %vm1892_vm7, %v1960_v60, %v1959_v38  ;;  %v2153_v5 = vrot.slane %v4666_v12, 2  ;;  %v2913_v17 = vld [vmem:[%s4903_s3 + $0xa] sm:$0x3] }
 0x130   : > { %2974 = vmatpush3.bf16.msra.mxu0 %v2170_v43  ;;  %v2236_v23 = vsel %vm2031_vm0, %v3129_v16, 0  ;;  %v5240_v54 = vmax.f32 %v5238_v48, %v5239_v7  ;;  %2969 = vmatprep.mubr.msk.bf16.mxu1 %vm610_vm2, %v1993_v0  ;;  %v2145_v53 = vsel %vm2142_vm13, %v2143_v24, %v2144_v26  ;;  %v2146_v45 = vrot.slane %v4640_v35, 2 }
 0x131   : > { %v2225_v63 = vpack.c.bf16 %v4643_v8, %v4640_v35  ;;  %3019 = vmatprep.subr.msk.bf16.mxu0 %vm2031_vm0, %v2910_v1  ;;  %v1964_v4 = vrot.slane %v1833_v39, 2  ;;  %v1985_v14 = vsel %vm1980_vm11, 0.0, %v1954_v37  ;;  %2970 = vmatmul.mubr.msk.bf16.vlgmr.msra.gmra.mxu1 %vm610_vm2, %v4715_v61  ;;  %v2151_v57 = vsel %vm2142_vm13, %v2149_v13, %v2150_v51 }
 0x132   : > { %v1991_v42 = vsel %vm1980_vm11, %v5240_v54, 0.0  ;;  %v2152_v29 = vrot.slane %v4646_v56, 2  ;;  %v1774_v32 = vmax.f32 %v4602_v58, %v4606_v44  ;;  %v1963_v35 = vsel %vm1895_vm8, %v1962_v10, %v1961_v18  ;;  %2980 = vmatpush3.bf16.msra.mxu1 %v2236_v23 }
 0x133   : > { %v2293_v8 = vrot.slane %v1985_v14, 1  ;;  %v2148_v31 = vsel %vm2142_vm13, %v2146_v45, %v2147_v50  ;;  %2981 = vmatprep.mubr.msk.bf16.mxu1 %vm610_vm2, %v2225_v63  ;;  %v2294_v19 = vrot.slane %v1991_v42, 1  ;;  %v2297_v3 = vpack.c.bf16 %v4688_v25, %v4685_v6  ;;  %3020 = vmatprep.subr.msk.bf16.mxu1 %vm2031_vm0, %v2913_v17  ;;  %v2922_v6 = vld [vmem:[%s4903_s3 + $0x10] sm:$0x3] }
 0x134   : > { %v2159_v12 = vpack.c.bf16 %v2148_v31, %v2145_v53  ;;  %v2154_v55 = vsel %vm2142_vm13, %v2152_v29, %v2153_v5  ;;  %v1966_v22 = vrot.slane %v4691_v47, 1  ;;  %v2308_v44 = vsel %vm2031_vm0, %v2910_v1, 0 }
 0x135   : > { %v2160_v58 = vpack.c.bf16 %v2154_v55, %v2151_v57  ;;  %v1965_v28 = vsel %vm1898_vm9, %v1964_v4, %v1963_v35  ;;  %v2226_v20 = vpack.c.bf16 %v1985_v14, %v4646_v56  ;;  %v2364_v27 = vrot.slane %v1991_v42, 2 }
 0x136   : > { %2975 = vmatprep.mubr.msk.bf16.mxu0 %vm610_vm2, %v2159_v12  ;;  %v2367_v52 = vpack.c.bf16 %v2151_v57, %v2148_v31  ;;  %v2363_v36 = vrot.slane %v1985_v14, 2  ;;  %v1835_v41 = vmul.f32 %v4499_v33, %v1774_v32  ;;  %v2295_v62 = vsel %vm2004_vm12, %v2293_v8, %v2294_v19 }
 0x137   : > { %2976 = vmatmul.mubr.msk.bf16.vlgmr.msra.gmra.mxu0 %vm610_vm2, %v2160_v58  ;;  %v2378_v34 = vsel %vm2031_vm0, %v2913_v17, 0  ;;  %v1967_v56 = vsel %vm1901_vm10, %v1966_v22, %v1965_v28  ;;  %v2298_v2 = vpack.c.bf16 %v2295_v62, %v4694_v11  ;;  %v2440_v39 = vsel %vm2031_vm0, %v2916_v49, 0 }
 0x138   : > { %2986 = vmatpush3.bf16.msra.mxu0 %v2308_v44  ;;  %2987 = vmatprep.mubr.msk.bf16.mxu0 %vm610_vm2, %v2297_v3  ;;  %v2365_v33 = vsel %vm2142_vm13, %v2363_v36, %v2364_v27  ;;  %v1986_v21 = vsel %vm1980_vm11, 0.0, %v1967_v56  ;;  %v1992_v9 = vsel %vm1980_vm11, %v1835_v41, 0.0  ;;  %v2508_v60 = vsel %vm2031_vm0, %v2919_v46, 0 }
 0x139   : > { %3021 = vmatprep.subr.msk.bf16.mxu0 %vm2031_vm0, %v2916_v49  ;;  %2982 = vmatmul.mubr.msk.bf16.vlgmr.msra.gmra.mxu1 %vm610_vm2, %v2226_v20  ;;  %v2368_v40 = vpack.c.bf16 %v2365_v33, %v2154_v55  ;;  %v2497_v25 = vrot.slane %v1986_v21, 1  ;;  %v2498_v47 = vrot.slane %v1992_v9, 1  ;;  %v2433_v30 = vpack.c.bf16 %v1986_v21, %v1985_v14 }
 0x13a   : > { %2992 = vmatpush3.bf16.msra.mxu1 %v2378_v34  ;;  %2993 = vmatprep.mubr.msk.bf16.mxu1 %vm610_vm2, %v2367_v52  ;;  %v2564_v38 = vrot.slane %v1992_v9, 2  ;;  %v2563_v24 = vrot.slane %v1986_v21, 2  ;;  %v2574_v26 = vsel %vm2031_vm0, %v2922_v6, 0 }
 0x13b   : > { %3022 = vmatprep.subr.msk.bf16.mxu1 %vm2031_vm0, %v2919_v46  ;;  %v2499_v11 = vsel %vm2004_vm12, %v2497_v25, %v2498_v47 }
 0x13c   : > { %v2501_v37 = vpack.c.bf16 %v2499_v11, %v2295_v62  ;;  %v2565_v10 = vsel %vm2142_vm13, %v2563_v24, %v2564_v38 }
 0x13d   : > { %v2567_v13 = vpack.c.bf16 %v2565_v10, %v2365_v33 }
 0x13f   : > { %2988 = vmatmul.mubr.msk.bf16.vlgmr.msra.gmra.mxu0 %vm610_vm2, %v2298_v2 }
 0x140   : > { %2998 = vmatpush3.bf16.msra.mxu0 %v2440_v39  ;;  %2999 = vmatprep.mubr.msk.bf16.mxu0 %vm610_vm2, %v4715_v61 }
 0x141   : > { %3023 = vmatprep.subr.msk.bf16.mxu0 %vm2031_vm0, %v2922_v6  ;;  %2994 = vmatmul.mubr.msk.bf16.vlgmr.msra.gmra.mxu1 %vm610_vm2, %v2368_v40 }
 0x142   : > { %3004 = vmatpush3.bf16.msra.mxu1 %v2508_v60  ;;  %3005 = vmatprep.mubr.msk.bf16.mxu1 %vm610_vm2, %v4700_v15 }
 0x147   : > { %3000 = vmatmul.mubr.msk.bf16.vlgmr.msra.gmra.mxu0 %vm610_vm2, %v2433_v30 }
 0x148   : > { %3010 = vmatpush3.bf16.msra.mxu0 %v2574_v26  ;;  %3011 = vmatprep.mubr.msk.bf16.mxu0 %vm610_vm2, %v2160_v58 }
 0x149   : > { %3006 = vmatmul.mubr.msk.bf16.vlgmr.msra.gmra.mxu1 %vm610_vm2, %v2501_v37 }
 0x14f   : > { %3012 = vmatmul.mubr.msk.bf16.vlgmr.msra.gmra.mxu0 %vm610_vm2, %v2567_v13 }
 0x1ef   : > { %v2965_v51 = vpop.f32.mrf.mxu0 }
 0x1f1   : > { %v2069_v15 = vpop.f32.mrf.mxu0  ;;  %v2971_v1 = vpop.f32.mrf.mxu1 }
 0x1f2   : > { %v2136_v48 = vadd.f32 %v2971_v1, %v2965_v51 }
 0x1f3   : > { %v2966_v50 = vpop.f32.mrf.mxu0  ;;  %v2127_v0 = vpop.f32.mrf.mxu1 }
 0x1f4   : > { %v2128_v42 = vadd.f32 %v2127_v0, %v2069_v15 }
 0x1f5   : > { %v2072_v61 = vpop.f32.mrf.mxu0  ;;  %v2972_v59 = vpop.f32.mrf.mxu1 }
 0x1f6   : > { %v2139_v14 = vadd.f32 %v2972_v59, %v2966_v50 }
 0x1f7   : > { %v2977_v43 = vpop.f32.mrf.mxu0  ;;  %v2130_v18 = vpop.f32.mrf.mxu1 }
 0x1f8   : > { %v2223_v53 = vadd.f32 %v2977_v43, %v2136_v48  ;;  %v2131_v29 = vadd.f32 %v2130_v18, %v2072_v61 }
 0x1f9   : > { %v2206_v5 = vpop.f32.mrf.mxu0  ;;  %v2983_v16 = vpop.f32.mrf.mxu1 }
 0x1fa   : > { %v2221_v17 = vadd.f32 %v2206_v5, %v2128_v42  ;;  %v2289_v32 = vadd.f32 %v2983_v16, %v2223_v53 }
 0x1fb   : > { %v2978_v23 = vpop.f32.mrf.mxu0  ;;  %v2272_v7 = vpop.f32.mrf.mxu1 }
 0x1fc   : > { %v2224_v8 = vadd.f32 %v2978_v23, %v2139_v14  ;;  %v2287_v19 = vadd.f32 %v2272_v7, %v2221_v17 }
 0x1fd   : > { %v2209_v54 = vpop.f32.mrf.mxu0  ;;  %v2984_v45 = vpop.f32.mrf.mxu1 }
 0x1fe   : > { %v2222_v3 = vadd.f32 %v2209_v54, %v2131_v29  ;;  %v2290_v28 = vadd.f32 %v2984_v45, %v2224_v8 }
 0x1ff   : > { %v2989_v63 = vpop.f32.mrf.mxu0  ;;  %v2275_v4 = vpop.f32.mrf.mxu1 }
 0x200   : > { %v2361_v12 = vadd.f32 %v2989_v63, %v2289_v32  ;;  %v2288_v49 = vadd.f32 %v2275_v4, %v2222_v3 }
 0x201   : > { %v2344_v57 = vpop.f32.mrf.mxu0  ;;  %v2995_v35 = vpop.f32.mrf.mxu1 }
 0x202   : > { %v2359_v58 = vadd.f32 %v2344_v57, %v2287_v19  ;;  %v2431_v27 = vadd.f32 %v2995_v35, %v2361_v12 }
 0x203   : > { %v2990_v31 = vpop.f32.mrf.mxu0  ;;  %v2414_v55 = vpop.f32.mrf.mxu1 }
 0x204   : > { %v2362_v36 = vadd.f32 %v2990_v31, %v2290_v28  ;;  %v2429_v62 = vadd.f32 %v2414_v55, %v2359_v58 }
 0x205   : > { %v2347_v22 = vpop.f32.mrf.mxu0  ;;  %v2996_v44 = vpop.f32.mrf.mxu1 }
 0x206   : > { %v2360_v34 = vadd.f32 %v2347_v22, %v2288_v49  ;;  %v2432_v9 = vadd.f32 %v2996_v44, %v2362_v36 }
 0x207   : > { %v3001_v20 = vpop.f32.mrf.mxu0  ;;  %v2417_v52 = vpop.f32.mrf.mxu1 }
 0x208   : > { %v2493_v56 = vadd.f32 %v3001_v20, %v2431_v27  ;;  %v2430_v40 = vadd.f32 %v2417_v52, %v2360_v34 }
 0x209   : > { %v2476_v41 = vpop.f32.mrf.mxu0  ;;  %v3007_v46 = vpop.f32.mrf.mxu1 }
 0x20a   : > { %v2491_v33 = vadd.f32 %v2476_v41, %v2429_v62  ;;  %v2561_v6 = vadd.f32 %v3007_v46, %v2493_v56 }
 0x20b   : > { %v3002_v2 = vpop.f32.mrf.mxu0  ;;  %v2544_v21 = vpop.f32.mrf.mxu1 }
 0x20c   : > { %v2494_v25 = vadd.f32 %v3002_v2, %v2432_v9  ;;  %v2559_v11 = vadd.f32 %v2544_v21, %v2491_v33 }
 0x20d   : > { %v2479_v39 = vpop.f32.mrf.mxu0  ;;  %v3008_v47 = vpop.f32.mrf.mxu1 }
 0x20e   : > { %v2492_v30 = vadd.f32 %v2479_v39, %v2430_v40  ;;  %v2562_v10 = vadd.f32 %v3008_v47, %v2494_v25 }
 0x20f   : > { %v3013_v60 = vpop.f32.mrf.mxu0  ;;  %v2547_v13 = vpop.f32.mrf.mxu1 }
 0x210   : > { %v2627_v38 = vadd.f32 %v3013_v60, %v2561_v6  ;;  %v2560_v15 = vadd.f32 %v2547_v13, %v2492_v30 }
 0x211   : > { %v2610_v24 = vpop.f32.mrf.mxu0 }
 0x212   : > { %v2665_v26 = vpack.c.bf16 %v2627_v38, %v2627_v38  ;;  %v2625_v37 = vadd.f32 %v2610_v24, %v2559_v11  ;;  %v2645_v43 = vmul.f32 %v2627_v38, %v2627_v38  ;;  %v2633_v54 = vsel %vm2629_vm15, %v2627_v38, 0.0 }
 0x213   : > { %v3014_v51 = vpop.f32.mrf.mxu0 }
 0x214   : > { %2670 = vst.msk [vmem:[%s346_s13 + $0x8] sm:$0xf] %vm2667_vm14, %v2665_v26  ;;  %v2663_v1 = vpack.c.bf16 %v2625_v37, %v2625_v37  ;;  %v2628_v50 = vadd.f32 %v3014_v51, %v2562_v10  ;;  %v2643_v61 = vmul.f32 %v2625_v37, %v2625_v37  ;;  %v2630_v5 = vsel %vm2629_vm15, %v2625_v37, 0.0 }
 0x215   : > { %v2613_v0 = vpop.f32.mrf.mxu0 }
 0x216   : > { %2668 = vst.msk [vmem:[%s346_s13] sm:$0xf] %vm2667_vm14, %v2663_v1  ;;  %v2626_v59 = vadd.f32 %v2613_v0, %v2560_v15  ;;  %v2666_v18 = vpack.c.bf16 %v2628_v50, %v2628_v50  ;;  %v2647_v42 = vsel %vm2629_vm15, %v2643_v61, 0.0  ;;  %v2646_v53 = vmul.f32 %v2628_v50, %v2628_v50 }
 0x218   : > { %v2631_v16 = vsel %vm2629_vm15, %v2626_v59, 0.0  ;;  %v2644_v23 = vmul.f32 %v2626_v59, %v2626_v59  ;;  %v2664_v48 = vpack.c.bf16 %v2626_v59, %v2626_v59  ;;  %2671 = vst.msk [vmem:[%s346_s13 + $0xc] sm:$0xf] %vm2667_vm14, %v2666_v18 }
 0x219   : > { %v2632_v7 = vadd.f32 %v2631_v16, %v2630_v5 }
 0x21a   : > { %v2648_v45 = vsel %vm2629_vm15, %v2644_v23, 0.0  ;;  %2669 = vst.msk [vmem:[%s346_s13 + $0x4] sm:$0xf] %vm2667_vm14, %v2664_v48 }
 0x21b   : > { %v2634_v63 = vadd.f32 %v2633_v54, %v2632_v7  ;;  %v2649_v17 = vadd.f32 %v2648_v45, %v2647_v42 }
 0x21c   : > { %3143 = shalt.err (!%p3140_p0)
}
 0x21d   : > { %s3144_s13 = scalar_lea.hbm %s4809_s26, 256  ;;  %s3148_s16 = scalar_lea.hbm %s4904_s4, 1024 }
 0x21e   : > { %p3145_p1 = scmp.ne.s32.totalorder %s4809_s26, %s3144_s13  ;;  %p3149_p5 = scmp.lt.s32.totalorder %s4809_s26, %s4904_s4 }
 0x21f   : > { %p3150_p6 = scmp.lt.s32.totalorder %s3148_s16, %s3144_s13 }
 0x220   : > { %p3146_p2 = pnand %p3145_p1, %p3341_p3 }
 0x221   : > { %p3151_p7 = por %p3150_p6, %p3149_p5 }
 0x222   : > { %p3147_p4 = pneg %p3146_p2 }
 0x224   : > { %p3152_p9 = pnand %p3151_p7, %p3147_p4 }
 0x226   : > { %3155 = shalt.err (!%p3152_p9)
}
 0x227   : > { %s3257_s8 = smov 64   ;;  %s3258_s27 = smov 4   ;;  %v2650_v4 = vsel %vm2629_vm15, %v2645_v43, 0.0  ;;  %v2635_v14 = vsel %vm2629_vm15, %v2628_v50, 0.0  ;;  %v2652_v32 = vsel %vm2629_vm15, %v2646_v53, 0.0  ;;  %vm2661_vm0 = vcmask 58368  }
 0x228   : > { %s5241_s12 = scalar_lea.sflag [#allocation3], %s4799_s9  ;;  %v2636_v57 = vadd.f32 %v2635_v14, %v2634_v63  ;;  %v2651_v29 = vadd.f32 %v2650_v4, %v2649_v17  ;;  %s2881_s30 = sshll.u32 %s4799_s9, 1 }
 0x229   : > { %3024 = dma.vmem_to_hbm [thread:$0]  (%p3341_p3), %s4811_s15, 256, %s4809_s26, %s5241_s12, %s3257_s8, %s3257_s8, %s3258_s27  }
 0x22a   : > { %v2637_v35 = vrot.slane %v2636_v57, 4  ;;  %v2653_v8 = vadd.f32 %v2652_v32, %v2651_v29  ;;  %s2930_s13 = sshll.u32 %s3240_s22, 1  ;;  %s353_s14 = scalar_lea.vmem [#allocation4], %s2881_s30 }
 0x22b   : > { %s2707_s15 = sadd.s32 %s3236_s21, %s2930_s13  ;;  %s2711_s17 = sshll.u32 %s353_s14, 4  ;;  %s2712_s17 = int_to_ptr.vmem [resolvable:$true] %s2711_s17 }
 0x22c   : > { %v2638_v31 = vadd.f32 %v2637_v35, %v2636_v57  ;;  %v2654_v19 = vrot.slane %v2653_v8, 4  ;;  %s2931_s26 = sshll.u32 %s2707_s15, 5  ;;  %s2678_s21 = scalar_lea.sflag [#allocation5], %s4799_s9 }
 0x22d   : > { %s4852_s8 = scalar_lea.hbm %s4905_s5, %s2931_s26  ;;  %s3156_s22 = scalar_lea.vmem %s2712_s17, 32 }
 0x22e   : > { %v2639_v3 = vrot.slane %v2638_v31, 2  ;;  %v2655_v12 = vadd.f32 %v2654_v19, %v2653_v8  ;;  %p3157_p10 = scmp.ne.s32.totalorder %s2712_s17, %s3156_s22  ;;  %s3259_s27 = smov [#allocation4]  }
 0x22f   : > { %s3160_s12 = sshll.u32 %s3259_s27, 4  ;;  %s3161_s12 = int_to_ptr.vmem [resolvable:$false] %s3160_s12 }
 0x230   : > { %v2640_v55 = vadd.f32 %v2639_v3, %v2638_v31  ;;  %v2656_v22 = vrot.slane %v2655_v12, 2  ;;  %p3158_p11 = pnand %p3157_p10, %p3341_p3  ;;  %s3162_s30 = scalar_lea.vmem %s3161_s12, 64 }
 0x231   : > { %p3163_p13 = scmp.lt.s32.totalorder %s2712_s17, %s3161_s12  ;;  %p3164_p0 = scmp.lt.s32.totalorder %s3162_s30, %s3156_s22 }
 0x232   : > { %v2641_v58 = vrot.slane %v2640_v55, 1  ;;  %v2657_v44 = vadd.f32 %v2656_v22, %v2655_v12  ;;  %p3159_p12 = pneg %p3158_p11 }
 0x233   : > { %p3165_p1 = por %p3164_p0, %p3163_p13 }
 0x234   : > { %v2658_v28 = vrot.slane %v2657_v44, 1  ;;  %v2642_v20 = vadd.f32 %v2641_v58, %v2640_v55 }
 0x235   : > { %p3166_p2 = pnand %p3165_p1, %p3159_p12 }
 0x236   : > { %v2659_v49 = vadd.f32 %v2658_v28, %v2657_v44 }
 0x238   : > { %v2660_v27 = vsel %vm1980_vm11, %v2642_v20, %v2659_v49 }
 0x239   : > { %2662 = vst.msk [vmem:[%s353_s14] sm:$0x3] %vm2661_vm0, %v2660_v27 }
 0x23a   : > { %3169 = shalt.err (!%p3166_p2)
}
 0x23b   : > { %s3170_s13 = scalar_lea.hbm %s4852_s8, 32  ;;  %s3174_s26 = scalar_lea.hbm %s4905_s5, 128 }
 0x23c   : > { %p3171_p4 = scmp.ne.s32.totalorder %s4852_s8, %s3170_s13  ;;  %p3175_p7 = scmp.lt.s32.totalorder %s4852_s8, %s4905_s5 }
 0x23d   : > { %p3176_p9 = scmp.lt.s32.totalorder %s3174_s26, %s3170_s13 }
 0x23e   : > { %p3172_p5 = pnand %p3171_p4, %p3341_p3 }
 0x23f   : > { %p3177_p10 = por %p3176_p9, %p3175_p7 }
 0x240   : > { %p3173_p6 = pneg %p3172_p5 }
 0x242   : > { %p3178_p11 = pnand %p3177_p10, %p3173_p6 }
 0x244   : > { %3181 = shalt.err (!%p3178_p11)
}
 0x245   : > { %3025 = dma.vmem_to_hbm [thread:$0]  (%p3341_p3), %s2712_s17, 32, %s4852_s8, %s2678_s21  }
 0x246 PF: > { %p3035_p12 = scmp.ge.s32.totalorder %s3252_s25, 2  ;;  %s2723_s10 = sand.u32 1, %s3224_s18  }
 0x247   : > { %s2724_s22 = scalar_lea.sflag [#allocation3], %s2723_s10 }
 0x248   : > { %p3029_p13 = pnand %p3035_p12, %p3350_p8 }
 0x24a   : > { %p3030_p0 = pneg %p3029_p13 }
 0x24c   : > { %3215 = dma.done.wait (%p3030_p0), %s2724_s22, 256  }
 0x24d   : > { %3217 = vsyncadd (%p3030_p0), %s2724_s22, 4294967040  ;;  %s2733_s27 = scalar_lea.sflag [#allocation5], %s2723_s10 }
 0x24e   : > { %3219 = dma.done.wait (%p3030_p0), %s2733_s27, 32  }
 0x24f   : > { %3221 = vsyncadd (%p3030_p0), %s2733_s27, 4294967264  ;;  %s22_s25 = sadd.s32 1, %s3252_s25   ;;  %s5242_s18 = smov %s3228_s19 }
 0x250   : > { %p19_p1 = scmp.ge.s32.totalorder %s22_s25, 6   ;;  %s5243_s19 = smov %s3232_s20 }
 0x251   : > { %s5244_s20 = smov %s3359_s11  ;;  %s5245_s21 = smov %s3244_s23 }
 0x252   : > { %s5246_s22 = smov %s3248_s24  ;;  %s5247_s23 = smov %s5250_s28 }
 0x253   : > { %s5248_s24 = smov %s5254_s29  ;;  %21 = sbr.rel (!%p19_p1) target bundleno = 7 (0x7), region = 102 }
 0x258   :  { %2738 = vsyncpa [#allocation3], 1 }
 0x259   :  { %2740 = vsyncpa [#allocation3 + $0x1], 1 }
 0x25a   :  { %2741 = vsyncpa [#allocation5], 1 }
 0x25b   :  { %2743 = vsyncpa [#allocation5 + $0x1], 1 }

</bundles_post_ra>
